<compile_context>
chip_gen: v7x
topology: tpu7x:2x2x1
jax: 0.10.0
libtpu: 0.0.40
codegen_flags: <defaults>
</compile_context>

<pallas_src>
import jax
import jax.numpy as jnp
from jax.experimental import pallas as pl
from jax.experimental.pallas import tpu as pltpu


def _round_up(x, m):
    return ((x + m - 1) // m) * m


def _min_row_align(dtype):
    # Minimum second-to-last block dim for packed dtypes: f32 -> 8, bf16 -> 16, int8/fp8 -> 32.
    return 8 * max(1, 4 // jnp.dtype(dtype).itemsize)


# ---------------------------------------------------------------------------
# One-time parameter prep (at load time, NOT per forward call):
# PyTorch nn.Linear stores weight as (out_features, in_features); store it (K, N) bf16 once
# so no transposed HBM copy of the weight is materialized on every forward.
# ---------------------------------------------------------------------------
def init_t5_proj_params(weight_nk, bias_n, *, param_dtype=jnp.bfloat16):
    return weight_nk.T.astype(param_dtype), bias_n.astype(jnp.float32)


# ---------------------------------------------------------------------------
# t5_proj kernel: inputs_t5 = object_features @ W + b
# ---------------------------------------------------------------------------
def t5_proj_kernel(x_ref, w_ref, b_ref, o_ref):
    # x_ref: (TM, K) bf16 row tile of flattened (bs*seq) object features
    # w_ref: (K, N)  bf16 weight, pre-transposed at init, resident across the grid
    # b_ref: (1, N)  f32 bias
    # o_ref: (TM, N) lane-dense output (N is a multiple of 128 -> unmasked vst)
    acc = jnp.dot(x_ref[...], w_ref[...], preferred_element_type=jnp.float32)
    o_ref[...] = (acc + b_ref[...]).astype(o_ref.dtype)


def _pallas_proj(x2, w_kn, b2, *, tm_eff, out_dtype, vmem_limit, single_buffer_weights):
    m, k = x2.shape
    _, n = w_kn.shape
    # Weight/bias index_map is constant across the grid -> single-buffer them (pure VMEM saving).
    resident = dict(pipeline_mode=pl.Buffered(1)) if single_buffer_weights else {}
    return pl.pallas_call(
        t5_proj_kernel,
        out_shape=jax.ShapeDtypeStruct((m, n), out_dtype),
        grid_spec=pltpu.PrefetchScalarGridSpec(
            num_scalar_prefetch=0,
            grid=(pl.cdiv(m, tm_eff),),          # ragged last row block handled by Pallas
            in_specs=[
                pl.BlockSpec((tm_eff, k), lambda i: (i, 0)),            # row tile of x
                pl.BlockSpec((k, n), lambda i: (0, 0), **resident),     # resident weight
                pl.BlockSpec((1, n), lambda i: (0, 0), **resident),     # resident bias
            ],
            out_specs=pl.BlockSpec((tm_eff, n), lambda i: (i, 0)),
        ),
        compiler_params=pltpu.CompilerParams(
            # v7x note: use pltpu.CORE_PARALLEL / pl.core_map here if "parallel" is measured
            # not to split row tiles across the 2 TensorCores; no-op on single-TC v5e/v6e.
            dimension_semantics=("parallel",),
            vmem_limit_bytes=vmem_limit,
        ),
    )(x2, w_kn, b2)


def t5_proj(object_features, weight_kn, bias_f32, *, tm=512, out_dtype=jnp.bfloat16,
            min_rows_for_pallas=1024, force_pallas=False):
    """object_features: (bs, seq, K); weight_kn: (K, N) from init_t5_proj_params; bias: (N,) f32."""
    bs, s, k = object_features.shape
    k_w, n = weight_kn.shape
    assert k_w == k, "weight in_features must match object feature dim"
    m = bs * s

    x2 = object_features.reshape(m, k).astype(weight_kn.dtype)   # bf16 activations
    b2 = bias_f32.astype(jnp.float32).reshape(1, n)

    if not force_pallas and m < min_rows_for_pallas:
        # Tiny problem: pallas_call dispatch overhead + custom-call fusion barrier dominate a
        # few-MFLOP matmul; let XLA fuse it into neighboring ops for free.
        out = (jnp.dot(x2, weight_kn, preferred_element_type=jnp.float32) + b2).astype(out_dtype)
        return out.reshape(bs, s, n)

    row_align = max(_min_row_align(x2.dtype), _min_row_align(out_dtype))
    tm_eff = _round_up(min(tm, m), row_align)

    isz = lambda dt: jnp.dtype(dt).itemsize
    # Resident (K,N) weight + bias + double-buffered x/out tiles, with 2x headroom, clamped to
    # a range that is safe on v5e (16 MiB scoped default) and v7x (64 MiB physical).
    need = (k * n * isz(weight_kn.dtype) + n * 4
            + 2 * tm_eff * k * isz(x2.dtype) + 2 * tm_eff * n * isz(out_dtype))
    vmem_limit = int(min(max(2 * need, 16 << 20), 64 << 20))

    try:
        out = _pallas_proj(x2, weight_kn, b2, tm_eff=tm_eff, out_dtype=out_dtype,
                           vmem_limit=vmem_limit, single_buffer_weights=True)
    except Exception:
        # Cross-version guard: older jax without BlockSpec(pipeline_mode=pl.Buffered(1));
        # fall back to default double-buffering of the resident weight/bias.
        out = _pallas_proj(x2, weight_kn, b2, tm_eff=tm_eff, out_dtype=out_dtype,
                           vmem_limit=vmem_limit, single_buffer_weights=False)
    return out.reshape(bs, s, n)


# ---------------------------------------------------------------------------
# targets = input_ids.masked_fill(input_ids == pad_token_id, -100)
# (2x32 int32 elementwise op: a fused XLA `where` is strictly cheaper than a pallas_call.)
# ---------------------------------------------------------------------------
def mask_targets(input_ids, pad_token_id=0):
    ids = input_ids.astype(jnp.int32)
    return jnp.where(ids == pad_token_id, jnp.int32(-100), ids)


if __name__ == "__main__":
    # Synthetic config (mirrors Generate_with_T5.__init__ / cfg):
    IN_DIM = 256             # t5_proj input dim: nn.Linear(256, hidden_size)
    T5_HIDDEN = 512          # stand-in for self.t5_model.config.hidden_size (multiple of 128)
    MAX_TXT_LEN = 32         # self.max_txt_len
    PAD_TOKEN_ID = 0         # T5 tokenizer pad token id
    GENERATE_LOSS_WEIGHT = 1.0  # only scales the (untranslated) T5 loss

    key = jax.random.PRNGKey(0)
    kx, kw, kb, kt, kx2 = jax.random.split(key, 5)

    # nn.Linear(256, T5_HIDDEN) params in PyTorch (out, in) layout; converted ONCE for the kernel.
    w_nk = jax.random.normal(kw, (T5_HIDDEN, IN_DIM), dtype=jnp.float32) * 0.02
    b_n = jax.random.normal(kb, (T5_HIDDEN,), dtype=jnp.float32) * 0.02
    w_kn, b_f32 = init_t5_proj_params(w_nk, b_n)      # (K, N) bf16 weight + f32 bias

    def ref_proj(x):
        xb = x.astype(w_kn.dtype)
        r = jnp.einsum("bok,kn->bon", xb, w_kn, preferred_element_type=jnp.float32)
        return (r + b_f32).astype(jnp.bfloat16)

    # --- (a) module-sized inputs (bs=2, 8 object queries): size-gated -> fused XLA path ---
    BS, NUM_OBJ = 2, 8
    object_features = jax.random.normal(kx, (BS, NUM_OBJ, IN_DIM), dtype=jnp.float32)
    object_features_att_mask = jnp.ones((BS, NUM_OBJ), dtype=jnp.int32)

    inputs_t5_small = t5_proj(object_features, w_kn, b_f32)
    encoder_atts = object_features_att_mask           # atts_t5 = object_features_att_mask

    # --- (b) same projection with the Pallas kernel exercised (multi-step row grid) ---
    BS2, NUM_OBJ2 = 2, 128                             # m = 256 rows -> 2 grid steps at tm=128
    object_features2 = jax.random.normal(kx2, (BS2, NUM_OBJ2, IN_DIM), dtype=jnp.float32)
    inputs_t5_pallas = t5_proj(object_features2, w_kn, b_f32, tm=128, force_pallas=True)

    # --- targets = input_ids.masked_fill(input_ids == pad, -100) ---
    output_token_ids = jax.random.randint(kt, (BS, MAX_TXT_LEN), 1, 1000, dtype=jnp.int32)
    output_token_ids = output_token_ids.at[:, MAX_TXT_LEN // 2:].set(PAD_TOKEN_ID)
    targets = mask_targets(output_token_ids, PAD_TOKEN_ID)

    inputs_t5_small, inputs_t5_pallas, targets = jax.block_until_ready(
        (inputs_t5_small, inputs_t5_pallas, targets))

    # TODO(synk): self.t5_model(inputs_embeds=inputs_t5, attention_mask=encoder_atts,
    #             decoder_attention_mask=..., labels=targets) and
    #             loss = outputs.loss * GENERATE_LOSS_WEIGHT — the pretrained T5 encoder-decoder
    #             (and host-side string tokenization / focal-CE loss) has no clean Pallas equivalent.

    # Pure-JAX reference checks (same bf16-in / f32-accumulate / bf16-out precision path).
    assert inputs_t5_small.shape == (BS, NUM_OBJ, T5_HIDDEN)
    assert inputs_t5_pallas.shape == (BS2, NUM_OBJ2, T5_HIDDEN)
    assert jnp.allclose(inputs_t5_small.astype(jnp.float32),
                        ref_proj(object_features).astype(jnp.float32), atol=1e-2, rtol=1e-2)
    assert jnp.allclose(inputs_t5_pallas.astype(jnp.float32),
                        ref_proj(object_features2).astype(jnp.float32), atol=1e-2, rtol=1e-2)

    ref_targets = jnp.where(output_token_ids == PAD_TOKEN_ID, -100, output_token_ids)
    assert jnp.array_equal(targets, ref_targets)

    print("KERNEL_OK")
</pallas_src>

<mosaic_0001>
module attributes {stable_mosaic.version = 11 : i64} {
  func.func @t5_proj_kernel(%arg0: i32, %arg1: memref<128x256xbf16, #tpu.memory_space<vmem>>, %arg2: memref<256x512xbf16, #tpu.memory_space<vmem>>, %arg3: memref<1x512xf32, #tpu.memory_space<vmem>>, %arg4: memref<128x512xbf16, #tpu.memory_space<vmem>>) attributes {dimension_semantics = [#tpu.dimension_semantics<parallel>], iteration_bounds = array<i64: 2>, scalar_prefetch = 0 : i64, scratch_operands = 0 : i64, tpu.core_type = #tpu.core_type<tc>, window_params = [{transform_indices = @transform_0, window_bounds = array<i64: 128, 256>}, {pipeline_mode = #tpu.pipeline_mode<synchronous>, transform_indices = @transform_1, window_bounds = array<i64: 256, 512>}, {pipeline_mode = #tpu.pipeline_mode<synchronous>, transform_indices = @transform_2, window_bounds = array<i64: 1, 512>}, {transform_indices = @transform_3, window_bounds = array<i64: 128, 512>}]} {
    %c0 = arith.constant 0 : index
    %c0_0 = arith.constant 0 : index
    %0 = vector.load %arg1[%c0, %c0_0] : memref<128x256xbf16, #tpu.memory_space<vmem>>, vector<128x256xbf16>
    %c0_1 = arith.constant 0 : index
    %c0_2 = arith.constant 0 : index
    %1 = vector.load %arg2[%c0_1, %c0_2] : memref<256x512xbf16, #tpu.memory_space<vmem>>, vector<256x512xbf16>
    %cst = arith.constant dense<0.000000e+00> : vector<128x512xf32>
    %2 = tpu.matmul %0, %1, %cst {dimension_numbers = #tpu.dot_dimension_numbers<[1], [0], [0], [1], [0, 0, 1, 1], [], []>} : vector<128x256xbf16>, vector<256x512xbf16>, vector<128x512xf32> -> vector<128x512xf32>
    %c0_3 = arith.constant 0 : index
    %c0_4 = arith.constant 0 : index
    %3 = vector.load %arg3[%c0_3, %c0_4] : memref<1x512xf32, #tpu.memory_space<vmem>>, vector<1x512xf32>
    %4 = vector.broadcast %3 : vector<1x512xf32> to vector<128x512xf32>
    %5 = arith.addf %2, %4 : vector<128x512xf32>
    %6 = arith.truncf %5 : vector<128x512xf32> to vector<128x512xbf16>
    %c0_5 = arith.constant 0 : index
    %c0_6 = arith.constant 0 : index
    %7 = vector.load %arg4[%c0_5, %c0_6] : memref<128x512xbf16, #tpu.memory_space<vmem>>, vector<128x512xbf16>
    tpu.vector_store %arg4[%c0_5, %c0_6], %6 {strides = array<i32>} : memref<128x512xbf16, #tpu.memory_space<vmem>>, vector<128x512xbf16>,
    return
  }
  func.func @transform_0(%arg0: i32) -> (i32, i32) {
    %c0_i32 = arith.constant 0 : i32
    %c0_i32_0 = arith.constant 0 : i32
    return %arg0, %c0_i32 : i32, i32
  }
  func.func @transform_1(%arg0: i32) -> (i32, i32) {
    %c0_i32 = arith.constant 0 : i32
    %c0_i32_0 = arith.constant 0 : i32
    %c0_i32_1 = arith.constant 0 : i32
    return %c0_i32, %c0_i32_0 : i32, i32
  }
  func.func @transform_2(%arg0: i32) -> (i32, i32) {
    %c0_i32 = arith.constant 0 : i32
    %c0_i32_0 = arith.constant 0 : i32
    %c0_i32_1 = arith.constant 0 : i32
    return %c0_i32, %c0_i32_0 : i32, i32
  }
  func.func @transform_3(%arg0: i32) -> (i32, i32) {
    %c0_i32 = arith.constant 0 : i32
    %c0_i32_0 = arith.constant 0 : i32
    return %arg0, %c0_i32 : i32, i32
  }
}

module attributes {stable_mosaic.version = 11 : i64} {
  func.func @t5_proj_kernel(%arg0: i32, %arg1: memref<128x256xbf16, #tpu.memory_space<vmem>>, %arg2: memref<256x512xbf16, #tpu.memory_space<vmem>>, %arg3: memref<1x512xf32, #tpu.memory_space<vmem>>, %arg4: memref<128x512xbf16, #tpu.memory_space<vmem>>) attributes {dimension_semantics = [#tpu.dimension_semantics<parallel>], iteration_bounds = array<i64: 2>, scalar_prefetch = 0 : i64, scratch_operands = 0 : i64, tpu.core_type = #tpu.core_type<tc>, window_params = [{transform_indices = @transform_0, window_bounds = array<i64: 128, 256>}, {pipeline_mode = #tpu.pipeline_mode<synchronous>, transform_indices = @transform_1, window_bounds = array<i64: 256, 512>}, {pipeline_mode = #tpu.pipeline_mode<synchronous>, transform_indices = @transform_2, window_bounds = array<i64: 1, 512>}, {transform_indices = @transform_3, window_bounds = array<i64: 128, 512>}]} {
    %c0 = arith.constant 0 : index
    %c0_0 = arith.constant 0 : index
    %0 = vector.load %arg1[%c0, %c0_0] : memref<128x256xbf16, #tpu.memory_space<vmem>>, vector<128x256xbf16>
    %c0_1 = arith.constant 0 : index
    %c0_2 = arith.constant 0 : index
    %1 = vector.load %arg2[%c0_1, %c0_2] : memref<256x512xbf16, #tpu.memory_space<vmem>>, vector<256x512xbf16>
    %cst = arith.constant dense<0.000000e+00> : vector<128x512xf32>
    %2 = tpu.matmul %0, %1, %cst {dimension_numbers = #tpu.dot_dimension_numbers<[1], [0], [0], [1], [0, 0, 1, 1], [], []>} : vector<128x256xbf16>, vector<256x512xbf16>, vector<128x512xf32> -> vector<128x512xf32>
    %c0_3 = arith.constant 0 : index
    %c0_4 = arith.constant 0 : index
    %3 = vector.load %arg3[%c0_3, %c0_4] : memref<1x512xf32, #tpu.memory_space<vmem>>, vector<1x512xf32>
    %4 = vector.broadcast %3 : vector<1x512xf32> to vector<128x512xf32>
    %5 = arith.addf %2, %4 : vector<128x512xf32>
    %6 = arith.truncf %5 : vector<128x512xf32> to vector<128x512xbf16>
    %c0_5 = arith.constant 0 : index
    %c0_6 = arith.constant 0 : index
    %7 = vector.load %arg4[%c0_5, %c0_6] : memref<128x512xbf16, #tpu.memory_space<vmem>>, vector<128x512xbf16>
    tpu.vector_store %arg4[%c0_5, %c0_6], %6 {strides = array<i32>} : memref<128x512xbf16, #tpu.memory_space<vmem>>, vector<128x512xbf16>,
    return
  }
  func.func @transform_0(%arg0: i32) -> (i32, i32) {
    %c0_i32 = arith.constant 0 : i32
    %c0_i32_0 = arith.constant 0 : i32
    return %arg0, %c0_i32 : i32, i32
  }
  func.func @transform_1(%arg0: i32) -> (i32, i32) {
    %c0_i32 = arith.constant 0 : i32
    %c0_i32_0 = arith.constant 0 : i32
    %c0_i32_1 = arith.constant 0 : i32
    return %c0_i32, %c0_i32_0 : i32, i32
  }
  func.func @transform_2(%arg0: i32) -> (i32, i32) {
    %c0_i32 = arith.constant 0 : i32
    %c0_i32_0 = arith.constant 0 : i32
    %c0_i32_1 = arith.constant 0 : i32
    return %c0_i32, %c0_i32_0 : i32, i32
  }
  func.func @transform_3(%arg0: i32) -> (i32, i32) {
    %c0_i32 = arith.constant 0 : i32
    %c0_i32_0 = arith.constant 0 : i32
    return %arg0, %c0_i32 : i32, i32
  }
}

</mosaic_0001>

<bundles_post_ra>
// kernel: tpu_custom_call.1
= control target key start
LH: loop header
LB: loop body
LE: loop exit
PB: predicated region body
PF: predicated region fallthrough
CT: control target
= control target key end

     0   :  { %8 = vsyncpa [#allocation3], 0  ;;  %s2095_s0 = inlined_call_operand.hbm [shape: bf16[256,256], index: 0, kind: input, shape index: {}]   ;;  %s2096_s1 = inlined_call_operand.hbm [shape: bf16[256,512], index: 1, kind: input, shape index: {}]   ;;  %s2097_s2 = inlined_call_operand.vmem [shape: f32[1,512], index: 2, kind: input, shape index: {}]   ;;  %s2098_s3 = inlined_call_operand.hbm [shape: bf16[256,512], index: 3, kind: output, shape index: {}]  }
   0x1   :  { %10 = vsyncpa [#allocation3 + $0x1], 0 }
   0x2   :  { %11 = vsyncpa [#allocation6], 0 }
   0x3   :  { %12 = vsyncpa [#allocation4], 0 }
   0x4   :  { %14 = vsyncpa [#allocation4 + $0x1], 0  ;;  %s1765_s12 = smov 0   ;;  %s1767_s13 = smov 0  }
   0x5   :  { %s1769_s14 = smov 0   ;;  %s1771_s15 = smov 0  }
   0x6 LB: > { %s1786_s16 = sadd.s32 4294967295, %s1734_s15   ;;  %s1257_s17 = sadd.s32 4294967294, %s1734_s15   ;;  %s1734_s15 = sphi %s1771_s15, %s2118_s15   ;;  %s1730_s14 = sphi %s1769_s14, %s2117_s14   ;;  %s1726_s13 = sphi %s1767_s13, %s2116_s13   ;;  %s1722_s12 = sphi %s1765_s12, %s2115_s12  }
   0x7   : > { %p40_p0 = scmp.ne.s32.totalorder %s1726_s13, %s1722_s12  ;;  %p2099_p1 = scmp.eq.s32.totalorder %s1786_s16, 0 }
   0x8   : > { %p112_p3 = scmp.eq.s32.totalorder %s1257_s17, 1  ;;  %p1258_p5 = scmp.ge.s32.totalorder %s1734_s15, 1 }
   0x9   : > { %p1795_p4 = por %p2099_p1, %p40_p0  ;;  %p119_p7 = scmp.lt.s32.totalorder %s1734_s15, 3 }
   0xa   : > { %p1800_p6 = por %p112_p3, %p40_p0  ;;  %s1736_s21 = smov [#allocation5]  }
   0xb   : > { %s2102_s18 = scalar_select %p1795_p4, 1, 0 }
   0xc   : > { %s2103_s19 = scalar_select %p1800_p6, 1, 0 }
   0xd   : > { %p1805_p8 = pnand %p1258_p5, %p119_p7  ;;  %s131_s22 = sshll.u32 %s1736_s21, 4  ;;  %s1809_s22 = int_to_ptr.vmem [resolvable:$true] %s131_s22 }
   0xe   : > { %s1821_s24 = sadd.s32 1, %s1734_s15   ;;  %s27_s25 = sadd.s32 1, %s1730_s14 }
   0xf   : > { %s2104_s20 = scalar_select %p1805_p8, 1, 0 }
  0x10   : > { %p1431_p9 = pneg %p1805_p8  ;;  %s24_s26 = ssub.s32 %s1734_s15, %s1821_s24 }
  0x11   : > { %s1606_s29 = scalar_lea.hbm %s2096_s1, 8192 }
  0x12   : > { %p1816_p11 = pnand %p1431_p9, %p2099_p1  ;;  %p1607_p12 = scmp.ne.s32.totalorder %s2096_s1, %s1606_s29 }
  0x13   : > { %p1613_p5 = scmp.lt.u32.totalorder %s1606_s29, %s2096_s1 }
  0x14   : > { %p1608_p13 = pneg %p1816_p11 }
  0x16   : > { %p1609_p0 = pnand %p1608_p13, %p1607_p12 }
  0x18   : > { %p1610_p3 = pneg %p1609_p0 }
  0x1a   : > { %p1615_p7 = pnand %p1613_p5, %p1610_p3 }
  0x1c   : > { %1618 = shalt.err (!%p1615_p7)
}
  0x1d   : > { %s1619_s7 = scalar_lea.vmem %s1809_s22, 8192  ;;  %p1627_p2 = scmp.lt.s32.totalorder %s1809_s22, %s1809_s22 }
  0x1e   : > { %p1620_p9 = scmp.ne.s32.totalorder %s1809_s22, %s1619_s7  ;;  %p1628_p6 = scmp.lt.s32.totalorder %s1619_s7, %s1619_s7 }
  0x20   : > { %p1622_p10 = pnand %p1620_p9, %p1608_p13  ;;  %p1629_p4 = por %p1628_p6, %p1627_p2 }
  0x22   : > { %p1623_p1 = pneg %p1622_p10 }
  0x24   : > { %p1630_p8 = pnand %p1629_p4, %p1623_p1 }
  0x26   : > { %1633 = shalt.err (!%p1630_p8)
}
  0x27   : > { %s1737_s8 = smov 256   ;;  %s1738_s9 = smov 16  }
  0x28   : > { %1434 = dma.hbm_to_vmem [thread:$0]  (!%p1816_p11), %s2096_s1, 8192, %s1809_s22, [#allocation6], %s1737_s8, %s1737_s8, %s1738_s9  }
  0x29   : > { %p25_p2 = scmp.eq.s32.totalorder %s24_s26, 0  ;;  %p34_p1 = scmp.ne.s32.totalorder %s1730_s14, %s1726_s13 }
  0x2a   : > { %p35_p4 = scmp.eq.s32.totalorder %s1734_s15, 0  ;;  %p1444_p6 = scmp.lt.s32.totalorder %s1734_s15, 2 }
  0x2b   : > { %s1852_s17 = scalar_select %p25_p2, %s1730_s14, %s27_s25  }
  0x2c   : > { %p36_p8 = por %p35_p4, %p34_p1  ;;  %p2106_p10 = scmp.eq.s32.totalorder %s1786_s16, 1 }
  0x2d   : > { %s148_s27 = sand.u32 1, %s1730_s14   ;;  %s1388_s28 = sshll.u32 %s1734_s15, 11 }
  0x2e   : > { %p1856_p12 = por %p2106_p10, %p34_p1  ;;  %s1261_s29 = sshll.u32 %s148_s27, 7 }
  0x2f   : > { %s1865_s4 = scalar_lea.hbm %s2095_s0, %s1388_s28  ;;  %s152_s22 = scalar_lea.vmem [#allocation2], %s1261_s29 }
  0x30   : > { %s160_s25 = sshll.u32 %s152_s22, 4  ;;  %p1867_p11 = pnand %p1444_p6, %p36_p8  ;;  %s1871_s25 = int_to_ptr.vmem [resolvable:$true] %s160_s25 }
  0x31   : > { %s1873_s5 = scalar_lea.sflag [#allocation3], %s148_s27  ;;  %s1634_s6 = scalar_lea.hbm %s1865_s4, 2048 }
  0x32   : > { %p1635_p13 = scmp.ne.s32.totalorder %s1865_s4, %s1634_s6  ;;  %p1636_p0 = pneg %p1867_p11 }
  0x33   : > { %s1639_s9 = scalar_lea.hbm %s2095_s0, 4096  ;;  %p1640_p7 = scmp.lt.u32.totalorder %s1865_s4, %s2095_s0 }
  0x34   : > { %p1637_p3 = pnand %p1636_p0, %p1635_p13  ;;  %p1641_p9 = scmp.lt.u32.totalorder %s1639_s9, %s1634_s6 }
  0x35   : > { %p1643_p1 = scmp.lt.u32.totalorder %s1634_s6, %s1865_s4 }
  0x36   : > { %p1638_p5 = pneg %p1637_p3  ;;  %p1642_p2 = por %p1641_p9, %p1640_p7 }
  0x38   : > { %p1644_p4 = por %p1643_p1, %p1642_p2 }
  0x3a   : > { %p1645_p6 = pnand %p1644_p4, %p1638_p5 }
  0x3c   : > { %1648 = shalt.err (!%p1645_p6)
}
  0x3d   : > { %s1649_s27 = scalar_lea.vmem %s1871_s25, 2048  ;;  %s1739_s28 = smov [#allocation2]  }
  0x3e   : > { %p1650_p8 = scmp.ne.s32.totalorder %s1871_s25, %s1649_s27  ;;  %s1654_s29 = sshll.u32 %s1739_s28, 4  ;;  %s1655_s29 = int_to_ptr.vmem [resolvable:$false] %s1654_s29 }
  0x3f   : > { %s1656_s23 = scalar_lea.vmem %s1655_s29, 4096  ;;  %p1657_p3 = scmp.lt.s32.totalorder %s1871_s25, %s1655_s29 }
  0x40   : > { %p1652_p10 = pnand %p1650_p8, %p1636_p0  ;;  %p1658_p7 = scmp.lt.s32.totalorder %s1656_s23, %s1649_s27 }
  0x42   : > { %p1653_p13 = pneg %p1652_p10  ;;  %p1659_p9 = por %p1658_p7, %p1657_p3 }
  0x44   : > { %p1660_p2 = pnand %p1659_p9, %p1653_p13 }
  0x46   : > { %1663 = shalt.err (!%p1660_p2)
}
  0x47   : > { %s1740_s30 = smov 128   ;;  %s1741_s22 = smov 8  }
  0x48   : > { %1438 = dma.hbm_to_vmem [thread:$0]  (!%p1867_p11), %s1865_s4, 2048, %s1871_s25, %s1873_s5, %s1740_s30, %s1740_s30, %s1741_s22  }
  0x49   : > { %p2109_p0 = scmp.ne.s32.totalorder %s2104_s20, 0 }
  0x4a   : > { %s1904_s6 = sand.u32 (!%p2109_p0), 1, %s1726_s13   ;;  %p2110_p5 = scmp.ne.s32.totalorder (!%p2109_p0), %s2102_s18, 0 }
  0x4b   : > { %172 = sbr.rel (%p2109_p0) target bundleno = 441 (0x1b9), region = 32  ;;  %s1266_s7 = sshll.u32 (!%p2109_p0), %s1904_s6, 7 }
  0x4c   : > { %s175_s8 = scalar_lea.sflag (!%p2109_p0), [#allocation3], %s1904_s6  ;;  %s1908_s9 = scalar_lea.vmem (!%p2109_p0), [#allocation2], %s1266_s7 }
  0x52   : > { %1709 = dma.done.wait (%p2110_p5), %s175_s8, 2048  }
  0x53   : > { %1711 = vsyncadd (%p2110_p5), %s175_s8, 4294965248  ;;  %p2111_p11 = scmp.eq.s32.totalorder %s1786_s16, 0 }
  0x55   : > { %1713 = dma.done.wait (%p2111_p11), [#allocation6], 8192   ;;  %p2112_p1 = pmov %p2111_p11 }
  0x56   : > { %v1486_v0 = vld [vmem:[#allocation5 + $0x4] ss:$16 sps:$4 sm:$0xff]   ;;  %v1488_v1 = vld [vmem:[#allocation5 + $0xc] ss:$16 sps:$4 sm:$0xff]   ;;  %v1490_v2 = vld [vmem:[#allocation5] ss:$16 sps:$4 sm:$0xff]  }
  0x57   : > { %1715 = vsyncadd (%p2112_p1), [#allocation6], 4294959104  ;;  %709 = vmatprep.subr.bf16.mxu0 %v1486_v0  ;;  %v1491_v3 = vld [vmem:[#allocation5 + $0x8] ss:$16 sps:$4 sm:$0xff]   ;;  %822 = vmatprep.subr.bf16.mxu1 %v1488_v1  ;;  %v1492_v4 = vld [vmem:[#allocation5 + $0x24] ss:$16 sps:$4 sm:$0xff]  }
  0x58   : > { %710 = vmatpush1.bf16.msra.mxu0 %v1490_v2  ;;  %823 = vmatpush1.bf16.msra.mxu1 %v1491_v3  ;;  %v1494_v5 = vld [vmem:[#allocation5 + $0x2c] ss:$16 sps:$4 sm:$0xff]   ;;  %v1496_v6 = vld [vmem:[#allocation5 + $0x20] ss:$16 sps:$4 sm:$0xff]   ;;  %v1497_v7 = vld [vmem:[#allocation5 + $0x28] ss:$16 sps:$4 sm:$0xff]  }
  0x59   : > { %711 = vmatprep.subr.bf16.mxu0 %v1492_v4  ;;  %824 = vmatprep.subr.bf16.mxu1 %v1494_v5  ;;  %v1498_v8 = vld [vmem:[#allocation5 + $0x44] ss:$16 sps:$4 sm:$0xff]   ;;  %v1500_v9 = vld [vmem:[#allocation5 + $0x4c] ss:$16 sps:$4 sm:$0xff]   ;;  %v1502_v10 = vld [vmem:[#allocation5 + $0x40] ss:$16 sps:$4 sm:$0xff]  }
  0x5a   : > { %v1503_v11 = vld [vmem:[#allocation5 + $0x48] ss:$16 sps:$4 sm:$0xff]   ;;  %v1504_v12 = vld [vmem:[#allocation5 + $0x64] ss:$16 sps:$4 sm:$0xff]   ;;  %v1506_v13 = vld [vmem:[#allocation5 + $0x6c] ss:$16 sps:$4 sm:$0xff]  }
  0x5b   : > { %v1508_v14 = vld [vmem:[#allocation5 + $0x60] ss:$16 sps:$4 sm:$0xff]   ;;  %v1509_v15 = vld [vmem:[#allocation5 + $0x68] ss:$16 sps:$4 sm:$0xff]   ;;  %v1510_v16 = vld [vmem:[#allocation5 + $0x84] ss:$16 sps:$4 sm:$0xff]  }
  0x5c   : > { %712 = vmatpush1.bf16.msra.mxu0 %v1496_v6  ;;  %825 = vmatpush1.bf16.msra.mxu1 %v1497_v7  ;;  %v1512_v17 = vld [vmem:[#allocation5 + $0x8c] ss:$16 sps:$4 sm:$0xff]   ;;  %v1514_v18 = vld [vmem:[#allocation5 + $0x80] ss:$16 sps:$4 sm:$0xff]   ;;  %v1515_v19 = vld [vmem:[#allocation5 + $0x88] ss:$16 sps:$4 sm:$0xff]  }
  0x5d   : > { %713 = vmatprep.subr.bf16.mxu0 %v1498_v8  ;;  %826 = vmatprep.subr.bf16.mxu1 %v1500_v9  ;;  %v1516_v20 = vld [vmem:[#allocation5 + $0xa4] ss:$16 sps:$4 sm:$0xff]   ;;  %v1518_v21 = vld [vmem:[#allocation5 + $0xac] ss:$16 sps:$4 sm:$0xff]   ;;  %v1520_v22 = vld [vmem:[#allocation5 + $0xa0] ss:$16 sps:$4 sm:$0xff]  }
  0x5e   : > { %v1521_v23 = vld [vmem:[#allocation5 + $0xa8] ss:$16 sps:$4 sm:$0xff]   ;;  %v1522_v24 = vld [vmem:[#allocation5 + $0xc4] ss:$16 sps:$4 sm:$0xff]   ;;  %v1524_v25 = vld [vmem:[#allocation5 + $0xcc] ss:$16 sps:$4 sm:$0xff]  }
  0x5f   : > { %v1526_v26 = vld [vmem:[#allocation5 + $0xc0] ss:$16 sps:$4 sm:$0xff]   ;;  %v1527_v27 = vld [vmem:[#allocation5 + $0xc8] ss:$16 sps:$4 sm:$0xff]   ;;  %v1528_v28 = vld [vmem:[#allocation5 + $0xe4] ss:$16 sps:$4 sm:$0xff]  }
  0x60   : > { %714 = vmatpush1.bf16.msra.mxu0 %v1502_v10  ;;  %827 = vmatpush1.bf16.msra.mxu1 %v1503_v11  ;;  %v1530_v29 = vld [vmem:[#allocation5 + $0xec] ss:$16 sps:$4 sm:$0xff]   ;;  %v1532_v30 = vld [vmem:[#allocation5 + $0xe0] ss:$16 sps:$4 sm:$0xff]   ;;  %v1533_v31 = vld [vmem:[#allocation5 + $0xe8] ss:$16 sps:$4 sm:$0xff]  }
  0x61   : > { %715 = vmatprep.subr.bf16.mxu0 %v1504_v12  ;;  %828 = vmatprep.subr.bf16.mxu1 %v1506_v13  ;;  %v1534_v32 = vld [vmem:[#allocation5 + $0x104] ss:$16 sps:$4 sm:$0xff]   ;;  %v1536_v33 = vld [vmem:[#allocation5 + $0x10c] ss:$16 sps:$4 sm:$0xff]   ;;  %v1538_v34 = vld [vmem:[#allocation5 + $0x100] ss:$16 sps:$4 sm:$0xff]  }
  0x62   : > { %v1539_v35 = vld [vmem:[#allocation5 + $0x108] ss:$16 sps:$4 sm:$0xff]   ;;  %v1540_v36 = vld [vmem:[#allocation5 + $0x124] ss:$16 sps:$4 sm:$0xff]   ;;  %v1542_v37 = vld [vmem:[#allocation5 + $0x12c] ss:$16 sps:$4 sm:$0xff]  }
  0x63   : > { %v1544_v38 = vld [vmem:[#allocation5 + $0x120] ss:$16 sps:$4 sm:$0xff]   ;;  %v1545_v39 = vld [vmem:[#allocation5 + $0x128] ss:$16 sps:$4 sm:$0xff]   ;;  %v1546_v40 = vld [vmem:[#allocation5 + $0x144] ss:$16 sps:$4 sm:$0xff]  }
  0x64   : > { %716 = vmatpush1.bf16.msra.mxu0 %v1508_v14  ;;  %829 = vmatpush1.bf16.msra.mxu1 %v1509_v15  ;;  %v1548_v41 = vld [vmem:[#allocation5 + $0x14c] ss:$16 sps:$4 sm:$0xff]   ;;  %v1550_v42 = vld [vmem:[#allocation5 + $0x140] ss:$16 sps:$4 sm:$0xff]   ;;  %v1551_v43 = vld [vmem:[#allocation5 + $0x148] ss:$16 sps:$4 sm:$0xff]  }
  0x65   : > { %717 = vmatprep.subr.bf16.mxu0 %v1510_v16  ;;  %830 = vmatprep.subr.bf16.mxu1 %v1512_v17  ;;  %v1552_v44 = vld [vmem:[#allocation5 + $0x164] ss:$16 sps:$4 sm:$0xff]   ;;  %v1554_v45 = vld [vmem:[#allocation5 + $0x16c] ss:$16 sps:$4 sm:$0xff]   ;;  %v1556_v46 = vld [vmem:[#allocation5 + $0x160] ss:$16 sps:$4 sm:$0xff]   ;;  %v289_v16 = vlaneseq }
  0x66   : > { %v1557_v47 = vld [vmem:[#allocation5 + $0x168] ss:$16 sps:$4 sm:$0xff]   ;;  %v1584_v48 = vld [vmem:[%s1908_s9 + $0x4] ss:$8 sps:$4 sm:$0xff]   ;;  %v1562_v51 = vld [vmem:[#allocation5 + $0x180] ss:$16 sps:$4 sm:$0xff]  }
  0x67   : > { %v1558_v49 = vld [vmem:[#allocation5 + $0x184] ss:$16 sps:$4 sm:$0xff]   ;;  %v1560_v50 = vld [vmem:[#allocation5 + $0x18c] ss:$16 sps:$4 sm:$0xff]   ;;  %741 = vmatprep.mubr.bf16.mxu0 %v1584_v48  ;;  %854 = vmatprep.mubr.bf16.mxu1 %v1584_v48  ;;  %v1563_v52 = vld [vmem:[#allocation5 + $0x188] ss:$16 sps:$4 sm:$0xff]  }
  0x68   : > { %718 = vmatpush1.bf16.msra.mxu0 %v1514_v18  ;;  %831 = vmatpush1.bf16.msra.mxu1 %v1515_v19  ;;  %v1564_v53 = vld [vmem:[#allocation5 + $0x1a4] ss:$16 sps:$4 sm:$0xff]   ;;  %v1566_v54 = vld [vmem:[#allocation5 + $0x1ac] ss:$16 sps:$4 sm:$0xff]   ;;  %v1568_v55 = vld [vmem:[#allocation5 + $0x1a0] ss:$16 sps:$4 sm:$0xff]  }
  0x69   : > { %719 = vmatprep.subr.bf16.mxu0 %v1516_v20  ;;  %832 = vmatprep.subr.bf16.mxu1 %v1518_v21  ;;  %v1569_v56 = vld [vmem:[#allocation5 + $0x1a8] ss:$16 sps:$4 sm:$0xff]   ;;  %v1570_v57 = vld [vmem:[#allocation5 + $0x1c4] ss:$16 sps:$4 sm:$0xff]   ;;  %v1572_v58 = vld [vmem:[#allocation5 + $0x1cc] ss:$16 sps:$4 sm:$0xff]  }
  0x6a   : > { %v1574_v59 = vld [vmem:[#allocation5 + $0x1c0] ss:$16 sps:$4 sm:$0xff]   ;;  %v1575_v60 = vld [vmem:[#allocation5 + $0x1c8] ss:$16 sps:$4 sm:$0xff]   ;;  %v1576_v61 = vld [vmem:[#allocation5 + $0x1e4] ss:$16 sps:$4 sm:$0xff]  }
  0x6b   : > { %v1578_v62 = vld [vmem:[#allocation5 + $0x1ec] ss:$16 sps:$4 sm:$0xff]   ;;  %v1580_v63 = vld [vmem:[#allocation5 + $0x1e0] ss:$16 sps:$4 sm:$0xff]   ;;  %v1581_v0 = vld [vmem:[#allocation5 + $0x1e8] ss:$16 sps:$4 sm:$0xff]  }
  0x6c   : > { %720 = vmatpush1.bf16.msra.mxu0 %v1520_v22  ;;  %833 = vmatpush1.bf16.msra.mxu1 %v1521_v23  ;;  %v1582_v1 = vld [vmem:[%s1908_s9] ss:$8 sps:$4 sm:$0xff]   ;;  %v1585_v2 = vld [vmem:[%s1908_s9 + $0x14] ss:$8 sps:$4 sm:$0xff]   ;;  %v1587_v3 = vld [vmem:[%s1908_s9 + $0x10] ss:$8 sps:$4 sm:$0xff]  }
  0x6d   : > { %721 = vmatprep.subr.bf16.mxu0 %v1522_v24  ;;  %834 = vmatprep.subr.bf16.mxu1 %v1524_v25  ;;  %v1588_v4 = vld [vmem:[%s1908_s9 + $0x24] ss:$8 sps:$4 sm:$0xff]   ;;  %v1590_v5 = vld [vmem:[%s1908_s9 + $0x20] ss:$8 sps:$4 sm:$0xff]   ;;  %v1591_v6 = vld [vmem:[%s1908_s9 + $0x34] ss:$8 sps:$4 sm:$0xff]  }
  0x6e   : > { %v1593_v7 = vld [vmem:[%s1908_s9 + $0x30] ss:$8 sps:$4 sm:$0xff]   ;;  %v1594_v8 = vld [vmem:[%s1908_s9 + $0x44] ss:$8 sps:$4 sm:$0xff]   ;;  %v1596_v9 = vld [vmem:[%s1908_s9 + $0x40] ss:$8 sps:$4 sm:$0xff]  }
  0x6f   : > { %v1597_v10 = vld [vmem:[%s1908_s9 + $0x54] ss:$8 sps:$4 sm:$0xff]   ;;  %v1599_v11 = vld [vmem:[%s1908_s9 + $0x50] ss:$8 sps:$4 sm:$0xff]   ;;  %v1600_v12 = vld [vmem:[%s1908_s9 + $0x64] ss:$8 sps:$4 sm:$0xff]  }
  0x70   : > { %722 = vmatpush1.bf16.msra.mxu0 %v1526_v26  ;;  %835 = vmatpush1.bf16.msra.mxu1 %v1527_v27  ;;  %v1602_v13 = vld [vmem:[%s1908_s9 + $0x60] ss:$8 sps:$4 sm:$0xff]   ;;  %v1603_v14 = vld [vmem:[%s1908_s9 + $0x74] ss:$8 sps:$4 sm:$0xff]   ;;  %v1605_v15 = vld [vmem:[%s1908_s9 + $0x70] ss:$8 sps:$4 sm:$0xff]  }
  0x71   : > { %723 = vmatprep.subr.bf16.mxu0 %v1528_v28  ;;  %836 = vmatprep.subr.bf16.mxu1 %v1530_v29  ;;  %v290_v17 = vshrl.u32 %v289_v16, 7  ;;  %v287_v20 = vld [vmem:[%s2097_s2] sm:$0xf]  ;;  %s1268_s4 = sshll.u32 %s1904_s6, 8  ;;  %s1422_s26 = sshll.u32 %s1786_s16, 12 }
  0x72   : > { %s1954_s25 = scalar_lea.vmem [#allocation7], %s1268_s4  ;;  %s2045_s16 = scalar_lea.hbm %s2098_s3, %s1422_s26 }
  0x73   : > { %v291_v18 = vsub.s32 0, %v290_v17  ;;  %v299_v19 = vsub.s32 2, %v290_v17  ;;  %v295_v21 = vsub.s32 1, %v290_v17  ;;  %v303_v22 = vsub.s32 3, %v290_v17  ;;  %s1174_s5 = sshll.u32 %s1954_s25, 4  ;;  %s1160_s27 = scalar_lea.sflag [#allocation4], %s1904_s6  ;;  %s2047_s5 = int_to_ptr.vmem [resolvable:$true] %s1174_s5 }
  0x74   : > { %724 = vmatpush1.bf16.msra.mxu0 %v1532_v30  ;;  %837 = vmatpush1.bf16.msra.mxu1 %v1533_v31  ;;  %s1664_s28 = scalar_lea.vmem %s2047_s5, 4096  ;;  %s1742_s29 = smov [#allocation7]  }
  0x75   : > { %725 = vmatprep.subr.bf16.mxu0 %v1534_v32  ;;  %838 = vmatprep.subr.bf16.mxu1 %v1536_v33  ;;  %v1937_v23 = vrot.slane %v287_v20, %v291_v18  ;;  %v1939_v24 = vrot.slane %v287_v20, %v299_v19  ;;  %v1941_v25 = vrot.slane %v287_v20, %v295_v21  ;;  %p1665_p4 = scmp.ne.s32.totalorder %s2047_s5, %s1664_s28  ;;  %s1668_s23 = sshll.u32 %s1742_s29, 4  ;;  %s1669_s23 = int_to_ptr.vmem [resolvable:$false] %s1668_s23 }
  0x76   : > { %v1943_v26 = vrot.slane %v287_v20, %v303_v22  ;;  %s1670_s30 = scalar_lea.vmem %s1669_s23, 8192  ;;  %p1671_p10 = scmp.lt.s32.totalorder %s2047_s5, %s1669_s23 }
  0x77   : > { %p1666_p6 = pnand %p1665_p4, %p1856_p12  ;;  %p1672_p13 = scmp.lt.s32.totalorder %s1670_s30, %s1664_s28 }
  0x78   : > { %726 = vmatpush1.bf16.msra.mxu0 %v1538_v34  ;;  %839 = vmatpush1.bf16.msra.mxu1 %v1539_v35 }
  0x79   : > { %727 = vmatprep.subr.bf16.mxu0 %v1540_v36  ;;  %840 = vmatprep.subr.bf16.mxu1 %v1542_v37  ;;  %p1667_p8 = pneg %p1666_p6  ;;  %p1673_p3 = por %p1672_p13, %p1671_p10 }
  0x7b   : > { %p1674_p7 = pnand %p1673_p3, %p1667_p8 }
  0x7c   : > { %728 = vmatpush1.bf16.msra.mxu0 %v1544_v38  ;;  %841 = vmatpush1.bf16.msra.mxu1 %v1545_v39 }
  0x7d   : > { %729 = vmatprep.subr.bf16.mxu0 %v1546_v40  ;;  %842 = vmatprep.subr.bf16.mxu1 %v1548_v41 }
  0x80   : > { %730 = vmatpush1.bf16.msra.mxu0 %v1550_v42  ;;  %843 = vmatpush1.bf16.msra.mxu1 %v1551_v43 }
  0x81   : > { %731 = vmatprep.subr.bf16.mxu0 %v1552_v44  ;;  %844 = vmatprep.subr.bf16.mxu1 %v1554_v45 }
  0x84   : > { %732 = vmatpush1.bf16.msra.mxu0 %v1556_v46  ;;  %845 = vmatpush1.bf16.msra.mxu1 %v1557_v47 }
  0x85   : > { %733 = vmatprep.subr.bf16.mxu0 %v1558_v49  ;;  %846 = vmatprep.subr.bf16.mxu1 %v1560_v50 }
  0x88   : > { %734 = vmatpush1.bf16.msra.mxu0 %v1562_v51  ;;  %847 = vmatpush1.bf16.msra.mxu1 %v1563_v52 }
  0x89   : > { %735 = vmatprep.subr.bf16.mxu0 %v1564_v53  ;;  %848 = vmatprep.subr.bf16.mxu1 %v1566_v54 }
  0x8c   : > { %736 = vmatpush1.bf16.msra.mxu0 %v1568_v55  ;;  %849 = vmatpush1.bf16.msra.mxu1 %v1569_v56 }
  0x8d   : > { %737 = vmatprep.subr.bf16.mxu0 %v1570_v57  ;;  %850 = vmatprep.subr.bf16.mxu1 %v1572_v58 }
  0x90   : > { %738 = vmatpush1.bf16.msra.mxu0 %v1574_v59  ;;  %851 = vmatpush1.bf16.msra.mxu1 %v1575_v60 }
  0x91   : > { %739 = vmatprep.subr.bf16.mxu0 %v1576_v61  ;;  %852 = vmatprep.subr.bf16.mxu1 %v1578_v62 }
  0x94   : > { %740 = vmatpush1.bf16.msra.mxu0 %v1580_v63  ;;  %853 = vmatpush1.bf16.msra.mxu1 %v1581_v0 }
  0x97   : > { %742 = vmatmul.mubr.bf16.vlgmr.msra.gmra.mrb[0].mxu0 %v1582_v1  ;;  %855 = vmatmul.mubr.bf16.vlgmr.msra.gmra.mrb[0].mxu1 %v1582_v1 }
  0x98   : > { %751 = vmatprep.mubr.bf16.mxu0 %v1585_v2  ;;  %864 = vmatprep.mubr.bf16.mxu1 %v1585_v2 }
  0x9f   : > { %752 = vmatmul.mubr.bf16.gmra.mrb[4].mxu0 %v1587_v3  ;;  %865 = vmatmul.mubr.bf16.gmra.mrb[4].mxu1 %v1587_v3 }
  0xa0   : > { %761 = vmatprep.mubr.bf16.mxu0 %v1588_v4  ;;  %874 = vmatprep.mubr.bf16.mxu1 %v1588_v4 }
  0xa7   : > { %762 = vmatmul.mubr.bf16.gmra.mrb[8].mxu0 %v1590_v5  ;;  %875 = vmatmul.mubr.bf16.gmra.mrb[8].mxu1 %v1590_v5 }
  0xa8   : > { %771 = vmatprep.mubr.bf16.mxu0 %v1591_v6  ;;  %884 = vmatprep.mubr.bf16.mxu1 %v1591_v6 }
  0xaf   : > { %772 = vmatmul.mubr.bf16.gmra.mrb[12].mxu0 %v1593_v7  ;;  %885 = vmatmul.mubr.bf16.gmra.mrb[12].mxu1 %v1593_v7 }
  0xb0   : > { %781 = vmatprep.mubr.bf16.mxu0 %v1594_v8  ;;  %894 = vmatprep.mubr.bf16.mxu1 %v1594_v8 }
  0xb7   : > { %782 = vmatmul.mubr.bf16.gmra.mrb[16].mxu0 %v1596_v9  ;;  %895 = vmatmul.mubr.bf16.gmra.mrb[16].mxu1 %v1596_v9 }
  0xb8   : > { %791 = vmatprep.mubr.bf16.mxu0 %v1597_v10  ;;  %904 = vmatprep.mubr.bf16.mxu1 %v1597_v10 }
  0xbf   : > { %792 = vmatmul.mubr.bf16.gmra.mrb[20].mxu0 %v1599_v11  ;;  %905 = vmatmul.mubr.bf16.gmra.mrb[20].mxu1 %v1599_v11 }
  0xc0   : > { %801 = vmatprep.mubr.bf16.mxu0 %v1600_v12  ;;  %914 = vmatprep.mubr.bf16.mxu1 %v1600_v12 }
  0xc7   : > { %802 = vmatmul.mubr.bf16.gmra.mrb[24].mxu0 %v1602_v13  ;;  %915 = vmatmul.mubr.bf16.gmra.mrb[24].mxu1 %v1602_v13 }
  0xc8   : > { %811 = vmatprep.mubr.bf16.mxu0 %v1603_v14  ;;  %924 = vmatprep.mubr.bf16.mxu1 %v1603_v14 }
  0xcf   : > { %812 = vmatmul.mubr.bf16.gmra.mrb[28].mxu0 %v1605_v15  ;;  %925 = vmatmul.mubr.bf16.gmra.mrb[28].mxu1 %v1605_v15 }
 0x16a   : > { %v743_v27 = vpop.f32.mrb[0].mxu0  ;;  %v856_v28 = vpop.f32.mrb[0].mxu1 }
 0x16b   : > { %v744_v29 = vadd.f32 %v743_v27, %v1937_v23  ;;  %v857_v30 = vadd.f32 %v856_v28, %v1939_v24  ;;  %v745_v31 = vpop.f32.mrb[1].mxu0  ;;  %v858_v32 = vpop.f32.mrb[1].mxu1 }
 0x16c   : > { %v746_v33 = vadd.f32 %v745_v31, %v1941_v25  ;;  %v859_v34 = vadd.f32 %v858_v32, %v1943_v26  ;;  %v747_v35 = vpop.f32.mrb[2].mxu0  ;;  %v860_v36 = vpop.f32.mrb[2].mxu1 }
 0x16d   : > { %v748_v37 = vadd.f32 %v747_v35, %v1937_v23  ;;  %v861_v38 = vadd.f32 %v860_v36, %v1939_v24  ;;  %v749_v39 = vpop.f32.mrb[3].mxu0  ;;  %v862_v40 = vpop.f32.mrb[3].mxu1 }
 0x16e   : > { %v1389_v41 = vpack.c.bf16 %v746_v33, %v744_v29  ;;  %v1390_v42 = vpack.c.bf16 %v859_v34, %v857_v30  ;;  %v750_v43 = vadd.f32 %v749_v39, %v1941_v25  ;;  %v863_v44 = vadd.f32 %v862_v40, %v1943_v26 }
 0x170   : > { %1127 = vst [vmem:[%s1954_s25] sm:$0xff] %v1389_v41  ;;  %1128 = vst [vmem:[%s1954_s25 + $0x8] sm:$0xff] %v1390_v42  ;;  %v1391_v45 = vpack.c.bf16 %v750_v43, %v748_v37  ;;  %v1392_v46 = vpack.c.bf16 %v863_v44, %v861_v38 }
 0x172   : > { %1129 = vst [vmem:[%s1954_s25 + $0x10] sm:$0xff] %v1391_v45  ;;  %1130 = vst [vmem:[%s1954_s25 + $0x18] sm:$0xff] %v1392_v46  ;;  %v753_v47 = vpop.f32.mrb[4].mxu0  ;;  %v866_v48 = vpop.f32.mrb[4].mxu1 }
 0x173   : > { %v754_v49 = vadd.f32 %v753_v47, %v1937_v23  ;;  %v867_v50 = vadd.f32 %v866_v48, %v1939_v24  ;;  %v755_v51 = vpop.f32.mrb[5].mxu0  ;;  %v868_v52 = vpop.f32.mrb[5].mxu1 }
 0x174   : > { %v756_v53 = vadd.f32 %v755_v51, %v1941_v25  ;;  %v869_v54 = vadd.f32 %v868_v52, %v1943_v26  ;;  %v757_v55 = vpop.f32.mrb[6].mxu0  ;;  %v870_v56 = vpop.f32.mrb[6].mxu1 }
 0x175   : > { %v758_v57 = vadd.f32 %v757_v55, %v1937_v23  ;;  %v871_v58 = vadd.f32 %v870_v56, %v1939_v24  ;;  %v759_v59 = vpop.f32.mrb[7].mxu0  ;;  %v872_v60 = vpop.f32.mrb[7].mxu1 }
 0x176   : > { %v1393_v61 = vpack.c.bf16 %v756_v53, %v754_v49  ;;  %v1394_v62 = vpack.c.bf16 %v869_v54, %v867_v50  ;;  %v760_v63 = vadd.f32 %v759_v59, %v1941_v25  ;;  %v873_v0 = vadd.f32 %v872_v60, %v1943_v26 }
 0x178   : > { %1131 = vst [vmem:[%s1954_s25 + $0x20] sm:$0xff] %v1393_v61  ;;  %1132 = vst [vmem:[%s1954_s25 + $0x28] sm:$0xff] %v1394_v62  ;;  %v1395_v1 = vpack.c.bf16 %v760_v63, %v758_v57  ;;  %v1396_v2 = vpack.c.bf16 %v873_v0, %v871_v58 }
 0x17a   : > { %1133 = vst [vmem:[%s1954_s25 + $0x30] sm:$0xff] %v1395_v1  ;;  %1134 = vst [vmem:[%s1954_s25 + $0x38] sm:$0xff] %v1396_v2  ;;  %v763_v3 = vpop.f32.mrb[8].mxu0  ;;  %v876_v4 = vpop.f32.mrb[8].mxu1 }
 0x17b   : > { %v764_v5 = vadd.f32 %v763_v3, %v1937_v23  ;;  %v877_v6 = vadd.f32 %v876_v4, %v1939_v24  ;;  %v765_v7 = vpop.f32.mrb[9].mxu0  ;;  %v878_v8 = vpop.f32.mrb[9].mxu1 }
 0x17c   : > { %v766_v9 = vadd.f32 %v765_v7, %v1941_v25  ;;  %v879_v10 = vadd.f32 %v878_v8, %v1943_v26  ;;  %v767_v11 = vpop.f32.mrb[10].mxu0  ;;  %v880_v12 = vpop.f32.mrb[10].mxu1 }
 0x17d   : > { %v768_v13 = vadd.f32 %v767_v11, %v1937_v23  ;;  %v881_v14 = vadd.f32 %v880_v12, %v1939_v24  ;;  %v769_v15 = vpop.f32.mrb[11].mxu0  ;;  %v882_v16 = vpop.f32.mrb[11].mxu1 }
 0x17e   : > { %v1397_v17 = vpack.c.bf16 %v766_v9, %v764_v5  ;;  %v1398_v18 = vpack.c.bf16 %v879_v10, %v877_v6  ;;  %v770_v19 = vadd.f32 %v769_v15, %v1941_v25  ;;  %v883_v20 = vadd.f32 %v882_v16, %v1943_v26 }
 0x180   : > { %1135 = vst [vmem:[%s1954_s25 + $0x40] sm:$0xff] %v1397_v17  ;;  %1136 = vst [vmem:[%s1954_s25 + $0x48] sm:$0xff] %v1398_v18  ;;  %v1399_v21 = vpack.c.bf16 %v770_v19, %v768_v13  ;;  %v1400_v22 = vpack.c.bf16 %v883_v20, %v881_v14 }
 0x182   : > { %1137 = vst [vmem:[%s1954_s25 + $0x50] sm:$0xff] %v1399_v21  ;;  %1138 = vst [vmem:[%s1954_s25 + $0x58] sm:$0xff] %v1400_v22  ;;  %v773_v27 = vpop.f32.mrb[12].mxu0  ;;  %v886_v28 = vpop.f32.mrb[12].mxu1 }
 0x183   : > { %v774_v29 = vadd.f32 %v773_v27, %v1937_v23  ;;  %v887_v30 = vadd.f32 %v886_v28, %v1939_v24  ;;  %v775_v31 = vpop.f32.mrb[13].mxu0  ;;  %v888_v32 = vpop.f32.mrb[13].mxu1 }
 0x184   : > { %v776_v33 = vadd.f32 %v775_v31, %v1941_v25  ;;  %v889_v34 = vadd.f32 %v888_v32, %v1943_v26  ;;  %v777_v35 = vpop.f32.mrb[14].mxu0  ;;  %v890_v36 = vpop.f32.mrb[14].mxu1 }
 0x185   : > { %v778_v37 = vadd.f32 %v777_v35, %v1937_v23  ;;  %v891_v38 = vadd.f32 %v890_v36, %v1939_v24  ;;  %v779_v39 = vpop.f32.mrb[15].mxu0  ;;  %v892_v40 = vpop.f32.mrb[15].mxu1 }
 0x186   : > { %v1401_v41 = vpack.c.bf16 %v776_v33, %v774_v29  ;;  %v1402_v42 = vpack.c.bf16 %v889_v34, %v887_v30  ;;  %v780_v43 = vadd.f32 %v779_v39, %v1941_v25  ;;  %v893_v44 = vadd.f32 %v892_v40, %v1943_v26 }
 0x188   : > { %1139 = vst [vmem:[%s1954_s25 + $0x60] sm:$0xff] %v1401_v41  ;;  %1140 = vst [vmem:[%s1954_s25 + $0x68] sm:$0xff] %v1402_v42  ;;  %v1403_v45 = vpack.c.bf16 %v780_v43, %v778_v37  ;;  %v1404_v46 = vpack.c.bf16 %v893_v44, %v891_v38 }
 0x18a   : > { %1141 = vst [vmem:[%s1954_s25 + $0x70] sm:$0xff] %v1403_v45  ;;  %1142 = vst [vmem:[%s1954_s25 + $0x78] sm:$0xff] %v1404_v46  ;;  %v783_v47 = vpop.f32.mrb[16].mxu0  ;;  %v896_v48 = vpop.f32.mrb[16].mxu1 }
 0x18b   : > { %v784_v49 = vadd.f32 %v783_v47, %v1937_v23  ;;  %v897_v50 = vadd.f32 %v896_v48, %v1939_v24  ;;  %v785_v51 = vpop.f32.mrb[17].mxu0  ;;  %v898_v52 = vpop.f32.mrb[17].mxu1 }
 0x18c   : > { %v786_v53 = vadd.f32 %v785_v51, %v1941_v25  ;;  %v899_v54 = vadd.f32 %v898_v52, %v1943_v26  ;;  %v787_v55 = vpop.f32.mrb[18].mxu0  ;;  %v900_v56 = vpop.f32.mrb[18].mxu1 }
 0x18d   : > { %v788_v57 = vadd.f32 %v787_v55, %v1937_v23  ;;  %v901_v58 = vadd.f32 %v900_v56, %v1939_v24  ;;  %v789_v59 = vpop.f32.mrb[19].mxu0  ;;  %v902_v60 = vpop.f32.mrb[19].mxu1 }
 0x18e   : > { %v1405_v61 = vpack.c.bf16 %v786_v53, %v784_v49  ;;  %v1406_v62 = vpack.c.bf16 %v899_v54, %v897_v50  ;;  %v790_v63 = vadd.f32 %v789_v59, %v1941_v25  ;;  %v903_v0 = vadd.f32 %v902_v60, %v1943_v26 }
 0x190   : > { %1143 = vst [vmem:[%s1954_s25 + $0x80] sm:$0xff] %v1405_v61  ;;  %1144 = vst [vmem:[%s1954_s25 + $0x88] sm:$0xff] %v1406_v62  ;;  %v1407_v1 = vpack.c.bf16 %v790_v63, %v788_v57  ;;  %v1408_v2 = vpack.c.bf16 %v903_v0, %v901_v58 }
 0x192   : > { %1145 = vst [vmem:[%s1954_s25 + $0x90] sm:$0xff] %v1407_v1  ;;  %1146 = vst [vmem:[%s1954_s25 + $0x98] sm:$0xff] %v1408_v2  ;;  %v793_v3 = vpop.f32.mrb[20].mxu0  ;;  %v906_v4 = vpop.f32.mrb[20].mxu1 }
 0x193   : > { %v794_v5 = vadd.f32 %v793_v3, %v1937_v23  ;;  %v907_v6 = vadd.f32 %v906_v4, %v1939_v24  ;;  %v795_v7 = vpop.f32.mrb[21].mxu0  ;;  %v908_v8 = vpop.f32.mrb[21].mxu1 }
 0x194   : > { %v796_v9 = vadd.f32 %v795_v7, %v1941_v25  ;;  %v909_v10 = vadd.f32 %v908_v8, %v1943_v26  ;;  %v797_v11 = vpop.f32.mrb[22].mxu0  ;;  %v910_v12 = vpop.f32.mrb[22].mxu1 }
 0x195   : > { %v798_v13 = vadd.f32 %v797_v11, %v1937_v23  ;;  %v911_v14 = vadd.f32 %v910_v12, %v1939_v24  ;;  %v799_v15 = vpop.f32.mrb[23].mxu0  ;;  %v912_v16 = vpop.f32.mrb[23].mxu1 }
 0x196   : > { %v1409_v17 = vpack.c.bf16 %v796_v9, %v794_v5  ;;  %v1410_v18 = vpack.c.bf16 %v909_v10, %v907_v6  ;;  %v800_v19 = vadd.f32 %v799_v15, %v1941_v25  ;;  %v913_v20 = vadd.f32 %v912_v16, %v1943_v26 }
 0x198   : > { %1147 = vst [vmem:[%s1954_s25 + $0xa0] sm:$0xff] %v1409_v17  ;;  %1148 = vst [vmem:[%s1954_s25 + $0xa8] sm:$0xff] %v1410_v18  ;;  %v1411_v21 = vpack.c.bf16 %v800_v19, %v798_v13  ;;  %v1412_v22 = vpack.c.bf16 %v913_v20, %v911_v14 }
 0x19a   : > { %1149 = vst [vmem:[%s1954_s25 + $0xb0] sm:$0xff] %v1411_v21  ;;  %1150 = vst [vmem:[%s1954_s25 + $0xb8] sm:$0xff] %v1412_v22  ;;  %v803_v27 = vpop.f32.mrb[24].mxu0  ;;  %v916_v28 = vpop.f32.mrb[24].mxu1 }
 0x19b   : > { %v804_v29 = vadd.f32 %v803_v27, %v1937_v23  ;;  %v917_v30 = vadd.f32 %v916_v28, %v1939_v24  ;;  %v805_v31 = vpop.f32.mrb[25].mxu0  ;;  %v918_v32 = vpop.f32.mrb[25].mxu1 }
 0x19c   : > { %v806_v33 = vadd.f32 %v805_v31, %v1941_v25  ;;  %v919_v34 = vadd.f32 %v918_v32, %v1943_v26  ;;  %v807_v35 = vpop.f32.mrb[26].mxu0  ;;  %v920_v36 = vpop.f32.mrb[26].mxu1 }
 0x19d   : > { %v808_v37 = vadd.f32 %v807_v35, %v1937_v23  ;;  %v921_v38 = vadd.f32 %v920_v36, %v1939_v24  ;;  %v809_v39 = vpop.f32.mrb[27].mxu0  ;;  %v922_v40 = vpop.f32.mrb[27].mxu1 }
 0x19e   : > { %v1413_v41 = vpack.c.bf16 %v806_v33, %v804_v29  ;;  %v1414_v42 = vpack.c.bf16 %v919_v34, %v917_v30  ;;  %v810_v43 = vadd.f32 %v809_v39, %v1941_v25  ;;  %v923_v44 = vadd.f32 %v922_v40, %v1943_v26 }
 0x1a0   : > { %1151 = vst [vmem:[%s1954_s25 + $0xc0] sm:$0xff] %v1413_v41  ;;  %1152 = vst [vmem:[%s1954_s25 + $0xc8] sm:$0xff] %v1414_v42  ;;  %v1415_v45 = vpack.c.bf16 %v810_v43, %v808_v37  ;;  %v1416_v46 = vpack.c.bf16 %v923_v44, %v921_v38 }
 0x1a2   : > { %1153 = vst [vmem:[%s1954_s25 + $0xd0] sm:$0xff] %v1415_v45  ;;  %1154 = vst [vmem:[%s1954_s25 + $0xd8] sm:$0xff] %v1416_v46  ;;  %v813_v47 = vpop.f32.mrb[28].mxu0  ;;  %v926_v48 = vpop.f32.mrb[28].mxu1 }
 0x1a3   : > { %v814_v49 = vadd.f32 %v813_v47, %v1937_v23  ;;  %v927_v50 = vadd.f32 %v926_v48, %v1939_v24  ;;  %v815_v51 = vpop.f32.mrb[29].mxu0  ;;  %v928_v52 = vpop.f32.mrb[29].mxu1 }
 0x1a4   : > { %v816_v53 = vadd.f32 %v815_v51, %v1941_v25  ;;  %v929_v54 = vadd.f32 %v928_v52, %v1943_v26  ;;  %v817_v55 = vpop.f32.mrb[30].mxu0  ;;  %v930_v56 = vpop.f32.mrb[30].mxu1 }
 0x1a5   : > { %v818_v57 = vadd.f32 %v817_v55, %v1937_v23  ;;  %v931_v58 = vadd.f32 %v930_v56, %v1939_v24  ;;  %v819_v59 = vpop.f32.mrb[31].mxu0  ;;  %v932_v60 = vpop.f32.mrb[31].mxu1 }
 0x1a6   : > { %v1417_v61 = vpack.c.bf16 %v816_v53, %v814_v49  ;;  %v1418_v62 = vpack.c.bf16 %v929_v54, %v927_v50  ;;  %v820_v63 = vadd.f32 %v819_v59, %v1941_v25  ;;  %v933_v0 = vadd.f32 %v932_v60, %v1943_v26 }
 0x1a8   : > { %1155 = vst [vmem:[%s1954_s25 + $0xe0] sm:$0xff] %v1417_v61  ;;  %1156 = vst [vmem:[%s1954_s25 + $0xe8] sm:$0xff] %v1418_v62  ;;  %v1419_v23 = vpack.c.bf16 %v820_v63, %v818_v57  ;;  %v1420_v24 = vpack.c.bf16 %v933_v0, %v931_v58 }
 0x1aa   : > { %1157 = vst [vmem:[%s1954_s25 + $0xf0] sm:$0xff] %v1419_v23  ;;  %1158 = vst [vmem:[%s1954_s25 + $0xf8] sm:$0xff] %v1420_v24 }
 0x1ab   : > { %1677 = shalt.err (!%p1674_p7)
}
 0x1ac   : > { %s1678_s22 = scalar_lea.hbm %s2045_s16, 4096  ;;  %s1682_s9 = scalar_lea.hbm %s2098_s3, 8192 }
 0x1ad   : > { %p1679_p9 = scmp.ne.s32.totalorder %s2045_s16, %s1678_s22  ;;  %p1683_p5 = scmp.lt.u32.totalorder %s2045_s16, %s2098_s3 }
 0x1ae   : > { %p1684_p11 = scmp.lt.u32.totalorder %s1682_s9, %s1678_s22  ;;  %p1686_p4 = scmp.lt.u32.totalorder %s1678_s22, %s2045_s16 }
 0x1af   : > { %p1680_p2 = pnand %p1679_p9, %p1856_p12 }
 0x1b0   : > { %p1685_p1 = por %p1684_p11, %p1683_p5 }
 0x1b1   : > { %p1681_p0 = pneg %p1680_p2 }
 0x1b2   : > { %p1687_p6 = por %p1686_p4, %p1685_p1 }
 0x1b4   : > { %p1688_p8 = pnand %p1687_p6, %p1681_p0 }
 0x1b6   : > { %1691 = shalt.err (!%p1688_p8)
}
 0x1b7   : > { %s1743_s4 = smov 256   ;;  %s1744_s25 = smov 16  }
 0x1b8   : > { %1429 = dma.vmem_to_hbm [thread:$0]  (%p1856_p12), %s2047_s5, 4096, %s2045_s16, %s1160_s27, %s1743_s4, %s1743_s4, %s1744_s25  }
 0x1b9 PF: > { %s1189_s26 = sand.u32 1, %s1722_s12   ;;  %p2113_p10 = scmp.ne.s32.totalorder %s2103_s19, 0 }
 0x1ba   : > { %p2114_p13 = scmp.ge.s32.totalorder %s1734_s15, 2  ;;  %s1190_s10 = scalar_lea.sflag [#allocation4], %s1189_s26 }
 0x1bc   : > { %p1440_p3 = pnand %p2114_p13, %p2113_p10 }
 0x1be   : > { %1717 = dma.done.wait (!%p1440_p3), %s1190_s10, 4096  }
 0x1bf   : > { %1719 = vsyncadd (!%p1440_p3), %s1190_s10, 4294963200  ;;  %p17_p7 = scmp.ge.s32.totalorder %s1821_s24, 4   ;;  %s2115_s12 = smov %s1726_s13 }
 0x1c0   : > { %s2116_s13 = smov %s1730_s14  ;;  %s2117_s14 = smov %s1852_s17 }
 0x1c1   : > { %s2118_s15 = smov %s1821_s24  ;;  %19 = sbr.rel (!%p17_p7) target bundleno = 6 (0x6), region = 81 }
 0x1c8   :  { %1195 = vsyncpa [#allocation3], 1 }
 0x1c9   :  { %1197 = vsyncpa [#allocation3 + $0x1], 1 }
 0x1ca   :  { %1198 = vsyncpa [#allocation6], 1 }
 0x1cb   :  { %1199 = vsyncpa [#allocation4], 1 }
 0x1cc   :  { %1201 = vsyncpa [#allocation4 + $0x1], 1 }

// kernel: tpu_custom_call.1
= control target key start
LH: loop header
LB: loop body
LE: loop exit
PB: predicated region body
PF: predicated region fallthrough
CT: control target
= control target key end

     0   :  { %8 = vsyncpa [#allocation3], 0  ;;  %s2095_s0 = inlined_call_operand.hbm [shape: bf16[256,256], index: 0, kind: input, shape index: {}]   ;;  %s2096_s1 = inlined_call_operand.hbm [shape: bf16[256,512], index: 1, kind: input, shape index: {}]   ;;  %s2097_s2 = inlined_call_operand.vmem [shape: f32[1,512], index: 2, kind: input, shape index: {}]   ;;  %s2098_s3 = inlined_call_operand.hbm [shape: bf16[256,512], index: 3, kind: output, shape index: {}]  }
   0x1   :  { %10 = vsyncpa [#allocation3 + $0x1], 0 }
   0x2   :  { %11 = vsyncpa [#allocation6], 0 }
   0x3   :  { %12 = vsyncpa [#allocation4], 0 }
   0x4   :  { %14 = vsyncpa [#allocation4 + $0x1], 0  ;;  %s1765_s12 = smov 0   ;;  %s1767_s13 = smov 0  }
   0x5   :  { %s1769_s14 = smov 0   ;;  %s1771_s15 = smov 0  }
   0x6 LB: > { %s1786_s16 = sadd.s32 4294967295, %s1734_s15   ;;  %s1257_s17 = sadd.s32 4294967294, %s1734_s15   ;;  %s1734_s15 = sphi %s1771_s15, %s2118_s15   ;;  %s1730_s14 = sphi %s1769_s14, %s2117_s14   ;;  %s1726_s13 = sphi %s1767_s13, %s2116_s13   ;;  %s1722_s12 = sphi %s1765_s12, %s2115_s12  }
   0x7   : > { %p40_p0 = scmp.ne.s32.totalorder %s1726_s13, %s1722_s12  ;;  %p2099_p1 = scmp.eq.s32.totalorder %s1786_s16, 0 }
   0x8   : > { %p112_p3 = scmp.eq.s32.totalorder %s1257_s17, 1  ;;  %p1258_p5 = scmp.ge.s32.totalorder %s1734_s15, 1 }
   0x9   : > { %p1795_p4 = por %p2099_p1, %p40_p0  ;;  %p119_p7 = scmp.lt.s32.totalorder %s1734_s15, 3 }
   0xa   : > { %p1800_p6 = por %p112_p3, %p40_p0  ;;  %s1736_s21 = smov [#allocation5]  }
   0xb   : > { %s2102_s18 = scalar_select %p1795_p4, 1, 0 }
   0xc   : > { %s2103_s19 = scalar_select %p1800_p6, 1, 0 }
   0xd   : > { %p1805_p8 = pnand %p1258_p5, %p119_p7  ;;  %s131_s22 = sshll.u32 %s1736_s21, 4  ;;  %s1809_s22 = int_to_ptr.vmem [resolvable:$true] %s131_s22 }
   0xe   : > { %s1821_s24 = sadd.s32 1, %s1734_s15   ;;  %s27_s25 = sadd.s32 1, %s1730_s14 }
   0xf   : > { %s2104_s20 = scalar_select %p1805_p8, 1, 0 }
  0x10   : > { %p1431_p9 = pneg %p1805_p8  ;;  %s24_s26 = ssub.s32 %s1734_s15, %s1821_s24 }
  0x11   : > { %s1606_s29 = scalar_lea.hbm %s2096_s1, 8192 }
  0x12   : > { %p1816_p11 = pnand %p1431_p9, %p2099_p1  ;;  %p1607_p12 = scmp.ne.s32.totalorder %s2096_s1, %s1606_s29 }
  0x13   : > { %p1613_p5 = scmp.lt.u32.totalorder %s1606_s29, %s2096_s1 }
  0x14   : > { %p1608_p13 = pneg %p1816_p11 }
  0x16   : > { %p1609_p0 = pnand %p1608_p13, %p1607_p12 }
  0x18   : > { %p1610_p3 = pneg %p1609_p0 }
  0x1a   : > { %p1615_p7 = pnand %p1613_p5, %p1610_p3 }
  0x1c   : > { %1618 = shalt.err (!%p1615_p7)
}
  0x1d   : > { %s1619_s7 = scalar_lea.vmem %s1809_s22, 8192  ;;  %p1627_p2 = scmp.lt.s32.totalorder %s1809_s22, %s1809_s22 }
  0x1e   : > { %p1620_p9 = scmp.ne.s32.totalorder %s1809_s22, %s1619_s7  ;;  %p1628_p6 = scmp.lt.s32.totalorder %s1619_s7, %s1619_s7 }
  0x20   : > { %p1622_p10 = pnand %p1620_p9, %p1608_p13  ;;  %p1629_p4 = por %p1628_p6, %p1627_p2 }
  0x22   : > { %p1623_p1 = pneg %p1622_p10 }
  0x24   : > { %p1630_p8 = pnand %p1629_p4, %p1623_p1 }
  0x26   : > { %1633 = shalt.err (!%p1630_p8)
}
  0x27   : > { %s1737_s8 = smov 256   ;;  %s1738_s9 = smov 16  }
  0x28   : > { %1434 = dma.hbm_to_vmem [thread:$0]  (!%p1816_p11), %s2096_s1, 8192, %s1809_s22, [#allocation6], %s1737_s8, %s1737_s8, %s1738_s9  }
  0x29   : > { %p25_p2 = scmp.eq.s32.totalorder %s24_s26, 0  ;;  %p34_p1 = scmp.ne.s32.totalorder %s1730_s14, %s1726_s13 }
  0x2a   : > { %p35_p4 = scmp.eq.s32.totalorder %s1734_s15, 0  ;;  %p1444_p6 = scmp.lt.s32.totalorder %s1734_s15, 2 }
  0x2b   : > { %s1852_s17 = scalar_select %p25_p2, %s1730_s14, %s27_s25  }
  0x2c   : > { %p36_p8 = por %p35_p4, %p34_p1  ;;  %p2106_p10 = scmp.eq.s32.totalorder %s1786_s16, 1 }
  0x2d   : > { %s148_s27 = sand.u32 1, %s1730_s14   ;;  %s1388_s28 = sshll.u32 %s1734_s15, 11 }
  0x2e   : > { %p1856_p12 = por %p2106_p10, %p34_p1  ;;  %s1261_s29 = sshll.u32 %s148_s27, 7 }
  0x2f   : > { %s1865_s4 = scalar_lea.hbm %s2095_s0, %s1388_s28  ;;  %s152_s22 = scalar_lea.vmem [#allocation2], %s1261_s29 }
  0x30   : > { %s160_s25 = sshll.u32 %s152_s22, 4  ;;  %p1867_p11 = pnand %p1444_p6, %p36_p8  ;;  %s1871_s25 = int_to_ptr.vmem [resolvable:$true] %s160_s25 }
  0x31   : > { %s1873_s5 = scalar_lea.sflag [#allocation3], %s148_s27  ;;  %s1634_s6 = scalar_lea.hbm %s1865_s4, 2048 }
  0x32   : > { %p1635_p13 = scmp.ne.s32.totalorder %s1865_s4, %s1634_s6  ;;  %p1636_p0 = pneg %p1867_p11 }
  0x33   : > { %s1639_s9 = scalar_lea.hbm %s2095_s0, 4096  ;;  %p1640_p7 = scmp.lt.u32.totalorder %s1865_s4, %s2095_s0 }
  0x34   : > { %p1637_p3 = pnand %p1636_p0, %p1635_p13  ;;  %p1641_p9 = scmp.lt.u32.totalorder %s1639_s9, %s1634_s6 }
  0x35   : > { %p1643_p1 = scmp.lt.u32.totalorder %s1634_s6, %s1865_s4 }
  0x36   : > { %p1638_p5 = pneg %p1637_p3  ;;  %p1642_p2 = por %p1641_p9, %p1640_p7 }
  0x38   : > { %p1644_p4 = por %p1643_p1, %p1642_p2 }
  0x3a   : > { %p1645_p6 = pnand %p1644_p4, %p1638_p5 }
  0x3c   : > { %1648 = shalt.err (!%p1645_p6)
}
  0x3d   : > { %s1649_s27 = scalar_lea.vmem %s1871_s25, 2048  ;;  %s1739_s28 = smov [#allocation2]  }
  0x3e   : > { %p1650_p8 = scmp.ne.s32.totalorder %s1871_s25, %s1649_s27  ;;  %s1654_s29 = sshll.u32 %s1739_s28, 4  ;;  %s1655_s29 = int_to_ptr.vmem [resolvable:$false] %s1654_s29 }
  0x3f   : > { %s1656_s23 = scalar_lea.vmem %s1655_s29, 4096  ;;  %p1657_p3 = scmp.lt.s32.totalorder %s1871_s25, %s1655_s29 }
  0x40   : > { %p1652_p10 = pnand %p1650_p8, %p1636_p0  ;;  %p1658_p7 = scmp.lt.s32.totalorder %s1656_s23, %s1649_s27 }
  0x42   : > { %p1653_p13 = pneg %p1652_p10  ;;  %p1659_p9 = por %p1658_p7, %p1657_p3 }
  0x44   : > { %p1660_p2 = pnand %p1659_p9, %p1653_p13 }
  0x46   : > { %1663 = shalt.err (!%p1660_p2)
}
  0x47   : > { %s1740_s30 = smov 128   ;;  %s1741_s22 = smov 8  }
  0x48   : > { %1438 = dma.hbm_to_vmem [thread:$0]  (!%p1867_p11), %s1865_s4, 2048, %s1871_s25, %s1873_s5, %s1740_s30, %s1740_s30, %s1741_s22  }
  0x49   : > { %p2109_p0 = scmp.ne.s32.totalorder %s2104_s20, 0 }
  0x4a   : > { %s1904_s6 = sand.u32 (!%p2109_p0), 1, %s1726_s13   ;;  %p2110_p5 = scmp.ne.s32.totalorder (!%p2109_p0), %s2102_s18, 0 }
  0x4b   : > { %172 = sbr.rel (%p2109_p0) target bundleno = 441 (0x1b9), region = 32  ;;  %s1266_s7 = sshll.u32 (!%p2109_p0), %s1904_s6, 7 }
  0x4c   : > { %s175_s8 = scalar_lea.sflag (!%p2109_p0), [#allocation3], %s1904_s6  ;;  %s1908_s9 = scalar_lea.vmem (!%p2109_p0), [#allocation2], %s1266_s7 }
  0x52   : > { %1709 = dma.done.wait (%p2110_p5), %s175_s8, 2048  }
  0x53   : > { %1711 = vsyncadd (%p2110_p5), %s175_s8, 4294965248  ;;  %p2111_p11 = scmp.eq.s32.totalorder %s1786_s16, 0 }
  0x55   : > { %1713 = dma.done.wait (%p2111_p11), [#allocation6], 8192   ;;  %p2112_p1 = pmov %p2111_p11 }
  0x56   : > { %v1486_v0 = vld [vmem:[#allocation5 + $0x4] ss:$16 sps:$4 sm:$0xff]   ;;  %v1488_v1 = vld [vmem:[#allocation5 + $0xc] ss:$16 sps:$4 sm:$0xff]   ;;  %v1490_v2 = vld [vmem:[#allocation5] ss:$16 sps:$4 sm:$0xff]  }
  0x57   : > { %1715 = vsyncadd (%p2112_p1), [#allocation6], 4294959104  ;;  %709 = vmatprep.subr.bf16.mxu0 %v1486_v0  ;;  %v1491_v3 = vld [vmem:[#allocation5 + $0x8] ss:$16 sps:$4 sm:$0xff]   ;;  %822 = vmatprep.subr.bf16.mxu1 %v1488_v1  ;;  %v1492_v4 = vld [vmem:[#allocation5 + $0x24] ss:$16 sps:$4 sm:$0xff]  }
  0x58   : > { %710 = vmatpush1.bf16.msra.mxu0 %v1490_v2  ;;  %823 = vmatpush1.bf16.msra.mxu1 %v1491_v3  ;;  %v1494_v5 = vld [vmem:[#allocation5 + $0x2c] ss:$16 sps:$4 sm:$0xff]   ;;  %v1496_v6 = vld [vmem:[#allocation5 + $0x20] ss:$16 sps:$4 sm:$0xff]   ;;  %v1497_v7 = vld [vmem:[#allocation5 + $0x28] ss:$16 sps:$4 sm:$0xff]  }
  0x59   : > { %711 = vmatprep.subr.bf16.mxu0 %v1492_v4  ;;  %824 = vmatprep.subr.bf16.mxu1 %v1494_v5  ;;  %v1498_v8 = vld [vmem:[#allocation5 + $0x44] ss:$16 sps:$4 sm:$0xff]   ;;  %v1500_v9 = vld [vmem:[#allocation5 + $0x4c] ss:$16 sps:$4 sm:$0xff]   ;;  %v1502_v10 = vld [vmem:[#allocation5 + $0x40] ss:$16 sps:$4 sm:$0xff]  }
  0x5a   : > { %v1503_v11 = vld [vmem:[#allocation5 + $0x48] ss:$16 sps:$4 sm:$0xff]   ;;  %v1504_v12 = vld [vmem:[#allocation5 + $0x64] ss:$16 sps:$4 sm:$0xff]   ;;  %v1506_v13 = vld [vmem:[#allocation5 + $0x6c] ss:$16 sps:$4 sm:$0xff]  }
  0x5b   : > { %v1508_v14 = vld [vmem:[#allocation5 + $0x60] ss:$16 sps:$4 sm:$0xff]   ;;  %v1509_v15 = vld [vmem:[#allocation5 + $0x68] ss:$16 sps:$4 sm:$0xff]   ;;  %v1510_v16 = vld [vmem:[#allocation5 + $0x84] ss:$16 sps:$4 sm:$0xff]  }
  0x5c   : > { %712 = vmatpush1.bf16.msra.mxu0 %v1496_v6  ;;  %825 = vmatpush1.bf16.msra.mxu1 %v1497_v7  ;;  %v1512_v17 = vld [vmem:[#allocation5 + $0x8c] ss:$16 sps:$4 sm:$0xff]   ;;  %v1514_v18 = vld [vmem:[#allocation5 + $0x80] ss:$16 sps:$4 sm:$0xff]   ;;  %v1515_v19 = vld [vmem:[#allocation5 + $0x88] ss:$16 sps:$4 sm:$0xff]  }
  0x5d   : > { %713 = vmatprep.subr.bf16.mxu0 %v1498_v8  ;;  %826 = vmatprep.subr.bf16.mxu1 %v1500_v9  ;;  %v1516_v20 = vld [vmem:[#allocation5 + $0xa4] ss:$16 sps:$4 sm:$0xff]   ;;  %v1518_v21 = vld [vmem:[#allocation5 + $0xac] ss:$16 sps:$4 sm:$0xff]   ;;  %v1520_v22 = vld [vmem:[#allocation5 + $0xa0] ss:$16 sps:$4 sm:$0xff]  }
  0x5e   : > { %v1521_v23 = vld [vmem:[#allocation5 + $0xa8] ss:$16 sps:$4 sm:$0xff]   ;;  %v1522_v24 = vld [vmem:[#allocation5 + $0xc4] ss:$16 sps:$4 sm:$0xff]   ;;  %v1524_v25 = vld [vmem:[#allocation5 + $0xcc] ss:$16 sps:$4 sm:$0xff]  }
  0x5f   : > { %v1526_v26 = vld [vmem:[#allocation5 + $0xc0] ss:$16 sps:$4 sm:$0xff]   ;;  %v1527_v27 = vld [vmem:[#allocation5 + $0xc8] ss:$16 sps:$4 sm:$0xff]   ;;  %v1528_v28 = vld [vmem:[#allocation5 + $0xe4] ss:$16 sps:$4 sm:$0xff]  }
  0x60   : > { %714 = vmatpush1.bf16.msra.mxu0 %v1502_v10  ;;  %827 = vmatpush1.bf16.msra.mxu1 %v1503_v11  ;;  %v1530_v29 = vld [vmem:[#allocation5 + $0xec] ss:$16 sps:$4 sm:$0xff]   ;;  %v1532_v30 = vld [vmem:[#allocation5 + $0xe0] ss:$16 sps:$4 sm:$0xff]   ;;  %v1533_v31 = vld [vmem:[#allocation5 + $0xe8] ss:$16 sps:$4 sm:$0xff]  }
  0x61   : > { %715 = vmatprep.subr.bf16.mxu0 %v1504_v12  ;;  %828 = vmatprep.subr.bf16.mxu1 %v1506_v13  ;;  %v1534_v32 = vld [vmem:[#allocation5 + $0x104] ss:$16 sps:$4 sm:$0xff]   ;;  %v1536_v33 = vld [vmem:[#allocation5 + $0x10c] ss:$16 sps:$4 sm:$0xff]   ;;  %v1538_v34 = vld [vmem:[#allocation5 + $0x100] ss:$16 sps:$4 sm:$0xff]  }
  0x62   : > { %v1539_v35 = vld [vmem:[#allocation5 + $0x108] ss:$16 sps:$4 sm:$0xff]   ;;  %v1540_v36 = vld [vmem:[#allocation5 + $0x124] ss:$16 sps:$4 sm:$0xff]   ;;  %v1542_v37 = vld [vmem:[#allocation5 + $0x12c] ss:$16 sps:$4 sm:$0xff]  }
  0x63   : > { %v1544_v38 = vld [vmem:[#allocation5 + $0x120] ss:$16 sps:$4 sm:$0xff]   ;;  %v1545_v39 = vld [vmem:[#allocation5 + $0x128] ss:$16 sps:$4 sm:$0xff]   ;;  %v1546_v40 = vld [vmem:[#allocation5 + $0x144] ss:$16 sps:$4 sm:$0xff]  }
  0x64   : > { %716 = vmatpush1.bf16.msra.mxu0 %v1508_v14  ;;  %829 = vmatpush1.bf16.msra.mxu1 %v1509_v15  ;;  %v1548_v41 = vld [vmem:[#allocation5 + $0x14c] ss:$16 sps:$4 sm:$0xff]   ;;  %v1550_v42 = vld [vmem:[#allocation5 + $0x140] ss:$16 sps:$4 sm:$0xff]   ;;  %v1551_v43 = vld [vmem:[#allocation5 + $0x148] ss:$16 sps:$4 sm:$0xff]  }
  0x65   : > { %717 = vmatprep.subr.bf16.mxu0 %v1510_v16  ;;  %830 = vmatprep.subr.bf16.mxu1 %v1512_v17  ;;  %v1552_v44 = vld [vmem:[#allocation5 + $0x164] ss:$16 sps:$4 sm:$0xff]   ;;  %v1554_v45 = vld [vmem:[#allocation5 + $0x16c] ss:$16 sps:$4 sm:$0xff]   ;;  %v1556_v46 = vld [vmem:[#allocation5 + $0x160] ss:$16 sps:$4 sm:$0xff]   ;;  %v289_v16 = vlaneseq }
  0x66   : > { %v1557_v47 = vld [vmem:[#allocation5 + $0x168] ss:$16 sps:$4 sm:$0xff]   ;;  %v1584_v48 = vld [vmem:[%s1908_s9 + $0x4] ss:$8 sps:$4 sm:$0xff]   ;;  %v1562_v51 = vld [vmem:[#allocation5 + $0x180] ss:$16 sps:$4 sm:$0xff]  }
  0x67   : > { %v1558_v49 = vld [vmem:[#allocation5 + $0x184] ss:$16 sps:$4 sm:$0xff]   ;;  %v1560_v50 = vld [vmem:[#allocation5 + $0x18c] ss:$16 sps:$4 sm:$0xff]   ;;  %741 = vmatprep.mubr.bf16.mxu0 %v1584_v48  ;;  %854 = vmatprep.mubr.bf16.mxu1 %v1584_v48  ;;  %v1563_v52 = vld [vmem:[#allocation5 + $0x188] ss:$16 sps:$4 sm:$0xff]  }
  0x68   : > { %718 = vmatpush1.bf16.msra.mxu0 %v1514_v18  ;;  %831 = vmatpush1.bf16.msra.mxu1 %v1515_v19  ;;  %v1564_v53 = vld [vmem:[#allocation5 + $0x1a4] ss:$16 sps:$4 sm:$0xff]   ;;  %v1566_v54 = vld [vmem:[#allocation5 + $0x1ac] ss:$16 sps:$4 sm:$0xff]   ;;  %v1568_v55 = vld [vmem:[#allocation5 + $0x1a0] ss:$16 sps:$4 sm:$0xff]  }
  0x69   : > { %719 = vmatprep.subr.bf16.mxu0 %v1516_v20  ;;  %832 = vmatprep.subr.bf16.mxu1 %v1518_v21  ;;  %v1569_v56 = vld [vmem:[#allocation5 + $0x1a8] ss:$16 sps:$4 sm:$0xff]   ;;  %v1570_v57 = vld [vmem:[#allocation5 + $0x1c4] ss:$16 sps:$4 sm:$0xff]   ;;  %v1572_v58 = vld [vmem:[#allocation5 + $0x1cc] ss:$16 sps:$4 sm:$0xff]  }
  0x6a   : > { %v1574_v59 = vld [vmem:[#allocation5 + $0x1c0] ss:$16 sps:$4 sm:$0xff]   ;;  %v1575_v60 = vld [vmem:[#allocation5 + $0x1c8] ss:$16 sps:$4 sm:$0xff]   ;;  %v1576_v61 = vld [vmem:[#allocation5 + $0x1e4] ss:$16 sps:$4 sm:$0xff]  }
  0x6b   : > { %v1578_v62 = vld [vmem:[#allocation5 + $0x1ec] ss:$16 sps:$4 sm:$0xff]   ;;  %v1580_v63 = vld [vmem:[#allocation5 + $0x1e0] ss:$16 sps:$4 sm:$0xff]   ;;  %v1581_v0 = vld [vmem:[#allocation5 + $0x1e8] ss:$16 sps:$4 sm:$0xff]  }
  0x6c   : > { %720 = vmatpush1.bf16.msra.mxu0 %v1520_v22  ;;  %833 = vmatpush1.bf16.msra.mxu1 %v1521_v23  ;;  %v1582_v1 = vld [vmem:[%s1908_s9] ss:$8 sps:$4 sm:$0xff]   ;;  %v1585_v2 = vld [vmem:[%s1908_s9 + $0x14] ss:$8 sps:$4 sm:$0xff]   ;;  %v1587_v3 = vld [vmem:[%s1908_s9 + $0x10] ss:$8 sps:$4 sm:$0xff]  }
  0x6d   : > { %721 = vmatprep.subr.bf16.mxu0 %v1522_v24  ;;  %834 = vmatprep.subr.bf16.mxu1 %v1524_v25  ;;  %v1588_v4 = vld [vmem:[%s1908_s9 + $0x24] ss:$8 sps:$4 sm:$0xff]   ;;  %v1590_v5 = vld [vmem:[%s1908_s9 + $0x20] ss:$8 sps:$4 sm:$0xff]   ;;  %v1591_v6 = vld [vmem:[%s1908_s9 + $0x34] ss:$8 sps:$4 sm:$0xff]  }
  0x6e   : > { %v1593_v7 = vld [vmem:[%s1908_s9 + $0x30] ss:$8 sps:$4 sm:$0xff]   ;;  %v1594_v8 = vld [vmem:[%s1908_s9 + $0x44] ss:$8 sps:$4 sm:$0xff]   ;;  %v1596_v9 = vld [vmem:[%s1908_s9 + $0x40] ss:$8 sps:$4 sm:$0xff]  }
  0x6f   : > { %v1597_v10 = vld [vmem:[%s1908_s9 + $0x54] ss:$8 sps:$4 sm:$0xff]   ;;  %v1599_v11 = vld [vmem:[%s1908_s9 + $0x50] ss:$8 sps:$4 sm:$0xff]   ;;  %v1600_v12 = vld [vmem:[%s1908_s9 + $0x64] ss:$8 sps:$4 sm:$0xff]  }
  0x70   : > { %722 = vmatpush1.bf16.msra.mxu0 %v1526_v26  ;;  %835 = vmatpush1.bf16.msra.mxu1 %v1527_v27  ;;  %v1602_v13 = vld [vmem:[%s1908_s9 + $0x60] ss:$8 sps:$4 sm:$0xff]   ;;  %v1603_v14 = vld [vmem:[%s1908_s9 + $0x74] ss:$8 sps:$4 sm:$0xff]   ;;  %v1605_v15 = vld [vmem:[%s1908_s9 + $0x70] ss:$8 sps:$4 sm:$0xff]  }
  0x71   : > { %723 = vmatprep.subr.bf16.mxu0 %v1528_v28  ;;  %836 = vmatprep.subr.bf16.mxu1 %v1530_v29  ;;  %v290_v17 = vshrl.u32 %v289_v16, 7  ;;  %v287_v20 = vld [vmem:[%s2097_s2] sm:$0xf]  ;;  %s1268_s4 = sshll.u32 %s1904_s6, 8  ;;  %s1422_s26 = sshll.u32 %s1786_s16, 12 }
  0x72   : > { %s1954_s25 = scalar_lea.vmem [#allocation7], %s1268_s4  ;;  %s2045_s16 = scalar_lea.hbm %s2098_s3, %s1422_s26 }
  0x73   : > { %v291_v18 = vsub.s32 0, %v290_v17  ;;  %v299_v19 = vsub.s32 2, %v290_v17  ;;  %v295_v21 = vsub.s32 1, %v290_v17  ;;  %v303_v22 = vsub.s32 3, %v290_v17  ;;  %s1174_s5 = sshll.u32 %s1954_s25, 4  ;;  %s1160_s27 = scalar_lea.sflag [#allocation4], %s1904_s6  ;;  %s2047_s5 = int_to_ptr.vmem [resolvable:$true] %s1174_s5 }
  0x74   : > { %724 = vmatpush1.bf16.msra.mxu0 %v1532_v30  ;;  %837 = vmatpush1.bf16.msra.mxu1 %v1533_v31  ;;  %s1664_s28 = scalar_lea.vmem %s2047_s5, 4096  ;;  %s1742_s29 = smov [#allocation7]  }
  0x75   : > { %725 = vmatprep.subr.bf16.mxu0 %v1534_v32  ;;  %838 = vmatprep.subr.bf16.mxu1 %v1536_v33  ;;  %v1937_v23 = vrot.slane %v287_v20, %v291_v18  ;;  %v1939_v24 = vrot.slane %v287_v20, %v299_v19  ;;  %v1941_v25 = vrot.slane %v287_v20, %v295_v21  ;;  %p1665_p4 = scmp.ne.s32.totalorder %s2047_s5, %s1664_s28  ;;  %s1668_s23 = sshll.u32 %s1742_s29, 4  ;;  %s1669_s23 = int_to_ptr.vmem [resolvable:$false] %s1668_s23 }
  0x76   : > { %v1943_v26 = vrot.slane %v287_v20, %v303_v22  ;;  %s1670_s30 = scalar_lea.vmem %s1669_s23, 8192  ;;  %p1671_p10 = scmp.lt.s32.totalorder %s2047_s5, %s1669_s23 }
  0x77   : > { %p1666_p6 = pnand %p1665_p4, %p1856_p12  ;;  %p1672_p13 = scmp.lt.s32.totalorder %s1670_s30, %s1664_s28 }
  0x78   : > { %726 = vmatpush1.bf16.msra.mxu0 %v1538_v34  ;;  %839 = vmatpush1.bf16.msra.mxu1 %v1539_v35 }
  0x79   : > { %727 = vmatprep.subr.bf16.mxu0 %v1540_v36  ;;  %840 = vmatprep.subr.bf16.mxu1 %v1542_v37  ;;  %p1667_p8 = pneg %p1666_p6  ;;  %p1673_p3 = por %p1672_p13, %p1671_p10 }
  0x7b   : > { %p1674_p7 = pnand %p1673_p3, %p1667_p8 }
  0x7c   : > { %728 = vmatpush1.bf16.msra.mxu0 %v1544_v38  ;;  %841 = vmatpush1.bf16.msra.mxu1 %v1545_v39 }
  0x7d   : > { %729 = vmatprep.subr.bf16.mxu0 %v1546_v40  ;;  %842 = vmatprep.subr.bf16.mxu1 %v1548_v41 }
  0x80   : > { %730 = vmatpush1.bf16.msra.mxu0 %v1550_v42  ;;  %843 = vmatpush1.bf16.msra.mxu1 %v1551_v43 }
  0x81   : > { %731 = vmatprep.subr.bf16.mxu0 %v1552_v44  ;;  %844 = vmatprep.subr.bf16.mxu1 %v1554_v45 }
  0x84   : > { %732 = vmatpush1.bf16.msra.mxu0 %v1556_v46  ;;  %845 = vmatpush1.bf16.msra.mxu1 %v1557_v47 }
  0x85   : > { %733 = vmatprep.subr.bf16.mxu0 %v1558_v49  ;;  %846 = vmatprep.subr.bf16.mxu1 %v1560_v50 }
  0x88   : > { %734 = vmatpush1.bf16.msra.mxu0 %v1562_v51  ;;  %847 = vmatpush1.bf16.msra.mxu1 %v1563_v52 }
  0x89   : > { %735 = vmatprep.subr.bf16.mxu0 %v1564_v53  ;;  %848 = vmatprep.subr.bf16.mxu1 %v1566_v54 }
  0x8c   : > { %736 = vmatpush1.bf16.msra.mxu0 %v1568_v55  ;;  %849 = vmatpush1.bf16.msra.mxu1 %v1569_v56 }
  0x8d   : > { %737 = vmatprep.subr.bf16.mxu0 %v1570_v57  ;;  %850 = vmatprep.subr.bf16.mxu1 %v1572_v58 }
  0x90   : > { %738 = vmatpush1.bf16.msra.mxu0 %v1574_v59  ;;  %851 = vmatpush1.bf16.msra.mxu1 %v1575_v60 }
  0x91   : > { %739 = vmatprep.subr.bf16.mxu0 %v1576_v61  ;;  %852 = vmatprep.subr.bf16.mxu1 %v1578_v62 }
  0x94   : > { %740 = vmatpush1.bf16.msra.mxu0 %v1580_v63  ;;  %853 = vmatpush1.bf16.msra.mxu1 %v1581_v0 }
  0x97   : > { %742 = vmatmul.mubr.bf16.vlgmr.msra.gmra.mrb[0].mxu0 %v1582_v1  ;;  %855 = vmatmul.mubr.bf16.vlgmr.msra.gmra.mrb[0].mxu1 %v1582_v1 }
  0x98   : > { %751 = vmatprep.mubr.bf16.mxu0 %v1585_v2  ;;  %864 = vmatprep.mubr.bf16.mxu1 %v1585_v2 }
  0x9f   : > { %752 = vmatmul.mubr.bf16.gmra.mrb[4].mxu0 %v1587_v3  ;;  %865 = vmatmul.mubr.bf16.gmra.mrb[4].mxu1 %v1587_v3 }
  0xa0   : > { %761 = vmatprep.mubr.bf16.mxu0 %v1588_v4  ;;  %874 = vmatprep.mubr.bf16.mxu1 %v1588_v4 }
  0xa7   : > { %762 = vmatmul.mubr.bf16.gmra.mrb[8].mxu0 %v1590_v5  ;;  %875 = vmatmul.mubr.bf16.gmra.mrb[8].mxu1 %v1590_v5 }
  0xa8   : > { %771 = vmatprep.mubr.bf16.mxu0 %v1591_v6  ;;  %884 = vmatprep.mubr.bf16.mxu1 %v1591_v6 }
  0xaf   : > { %772 = vmatmul.mubr.bf16.gmra.mrb[12].mxu0 %v1593_v7  ;;  %885 = vmatmul.mubr.bf16.gmra.mrb[12].mxu1 %v1593_v7 }
  0xb0   : > { %781 = vmatprep.mubr.bf16.mxu0 %v1594_v8  ;;  %894 = vmatprep.mubr.bf16.mxu1 %v1594_v8 }
  0xb7   : > { %782 = vmatmul.mubr.bf16.gmra.mrb[16].mxu0 %v1596_v9  ;;  %895 = vmatmul.mubr.bf16.gmra.mrb[16].mxu1 %v1596_v9 }
  0xb8   : > { %791 = vmatprep.mubr.bf16.mxu0 %v1597_v10  ;;  %904 = vmatprep.mubr.bf16.mxu1 %v1597_v10 }
  0xbf   : > { %792 = vmatmul.mubr.bf16.gmra.mrb[20].mxu0 %v1599_v11  ;;  %905 = vmatmul.mubr.bf16.gmra.mrb[20].mxu1 %v1599_v11 }
  0xc0   : > { %801 = vmatprep.mubr.bf16.mxu0 %v1600_v12  ;;  %914 = vmatprep.mubr.bf16.mxu1 %v1600_v12 }
  0xc7   : > { %802 = vmatmul.mubr.bf16.gmra.mrb[24].mxu0 %v1602_v13  ;;  %915 = vmatmul.mubr.bf16.gmra.mrb[24].mxu1 %v1602_v13 }
  0xc8   : > { %811 = vmatprep.mubr.bf16.mxu0 %v1603_v14  ;;  %924 = vmatprep.mubr.bf16.mxu1 %v1603_v14 }
  0xcf   : > { %812 = vmatmul.mubr.bf16.gmra.mrb[28].mxu0 %v1605_v15  ;;  %925 = vmatmul.mubr.bf16.gmra.mrb[28].mxu1 %v1605_v15 }
 0x16a   : > { %v743_v27 = vpop.f32.mrb[0].mxu0  ;;  %v856_v28 = vpop.f32.mrb[0].mxu1 }
 0x16b   : > { %v744_v29 = vadd.f32 %v743_v27, %v1937_v23  ;;  %v857_v30 = vadd.f32 %v856_v28, %v1939_v24  ;;  %v745_v31 = vpop.f32.mrb[1].mxu0  ;;  %v858_v32 = vpop.f32.mrb[1].mxu1 }
 0x16c   : > { %v746_v33 = vadd.f32 %v745_v31, %v1941_v25  ;;  %v859_v34 = vadd.f32 %v858_v32, %v1943_v26  ;;  %v747_v35 = vpop.f32.mrb[2].mxu0  ;;  %v860_v36 = vpop.f32.mrb[2].mxu1 }
 0x16d   : > { %v748_v37 = vadd.f32 %v747_v35, %v1937_v23  ;;  %v861_v38 = vadd.f32 %v860_v36, %v1939_v24  ;;  %v749_v39 = vpop.f32.mrb[3].mxu0  ;;  %v862_v40 = vpop.f32.mrb[3].mxu1 }
 0x16e   : > { %v1389_v41 = vpack.c.bf16 %v746_v33, %v744_v29  ;;  %v1390_v42 = vpack.c.bf16 %v859_v34, %v857_v30  ;;  %v750_v43 = vadd.f32 %v749_v39, %v1941_v25  ;;  %v863_v44 = vadd.f32 %v862_v40, %v1943_v26 }
 0x170   : > { %1127 = vst [vmem:[%s1954_s25] sm:$0xff] %v1389_v41  ;;  %1128 = vst [vmem:[%s1954_s25 + $0x8] sm:$0xff] %v1390_v42  ;;  %v1391_v45 = vpack.c.bf16 %v750_v43, %v748_v37  ;;  %v1392_v46 = vpack.c.bf16 %v863_v44, %v861_v38 }
 0x172   : > { %1129 = vst [vmem:[%s1954_s25 + $0x10] sm:$0xff] %v1391_v45  ;;  %1130 = vst [vmem:[%s1954_s25 + $0x18] sm:$0xff] %v1392_v46  ;;  %v753_v47 = vpop.f32.mrb[4].mxu0  ;;  %v866_v48 = vpop.f32.mrb[4].mxu1 }
 0x173   : > { %v754_v49 = vadd.f32 %v753_v47, %v1937_v23  ;;  %v867_v50 = vadd.f32 %v866_v48, %v1939_v24  ;;  %v755_v51 = vpop.f32.mrb[5].mxu0  ;;  %v868_v52 = vpop.f32.mrb[5].mxu1 }
 0x174   : > { %v756_v53 = vadd.f32 %v755_v51, %v1941_v25  ;;  %v869_v54 = vadd.f32 %v868_v52, %v1943_v26  ;;  %v757_v55 = vpop.f32.mrb[6].mxu0  ;;  %v870_v56 = vpop.f32.mrb[6].mxu1 }
 0x175   : > { %v758_v57 = vadd.f32 %v757_v55, %v1937_v23  ;;  %v871_v58 = vadd.f32 %v870_v56, %v1939_v24  ;;  %v759_v59 = vpop.f32.mrb[7].mxu0  ;;  %v872_v60 = vpop.f32.mrb[7].mxu1 }
 0x176   : > { %v1393_v61 = vpack.c.bf16 %v756_v53, %v754_v49  ;;  %v1394_v62 = vpack.c.bf16 %v869_v54, %v867_v50  ;;  %v760_v63 = vadd.f32 %v759_v59, %v1941_v25  ;;  %v873_v0 = vadd.f32 %v872_v60, %v1943_v26 }
 0x178   : > { %1131 = vst [vmem:[%s1954_s25 + $0x20] sm:$0xff] %v1393_v61  ;;  %1132 = vst [vmem:[%s1954_s25 + $0x28] sm:$0xff] %v1394_v62  ;;  %v1395_v1 = vpack.c.bf16 %v760_v63, %v758_v57  ;;  %v1396_v2 = vpack.c.bf16 %v873_v0, %v871_v58 }
 0x17a   : > { %1133 = vst [vmem:[%s1954_s25 + $0x30] sm:$0xff] %v1395_v1  ;;  %1134 = vst [vmem:[%s1954_s25 + $0x38] sm:$0xff] %v1396_v2  ;;  %v763_v3 = vpop.f32.mrb[8].mxu0  ;;  %v876_v4 = vpop.f32.mrb[8].mxu1 }
 0x17b   : > { %v764_v5 = vadd.f32 %v763_v3, %v1937_v23  ;;  %v877_v6 = vadd.f32 %v876_v4, %v1939_v24  ;;  %v765_v7 = vpop.f32.mrb[9].mxu0  ;;  %v878_v8 = vpop.f32.mrb[9].mxu1 }
 0x17c   : > { %v766_v9 = vadd.f32 %v765_v7, %v1941_v25  ;;  %v879_v10 = vadd.f32 %v878_v8, %v1943_v26  ;;  %v767_v11 = vpop.f32.mrb[10].mxu0  ;;  %v880_v12 = vpop.f32.mrb[10].mxu1 }
 0x17d   : > { %v768_v13 = vadd.f32 %v767_v11, %v1937_v23  ;;  %v881_v14 = vadd.f32 %v880_v12, %v1939_v24  ;;  %v769_v15 = vpop.f32.mrb[11].mxu0  ;;  %v882_v16 = vpop.f32.mrb[11].mxu1 }
 0x17e   : > { %v1397_v17 = vpack.c.bf16 %v766_v9, %v764_v5  ;;  %v1398_v18 = vpack.c.bf16 %v879_v10, %v877_v6  ;;  %v770_v19 = vadd.f32 %v769_v15, %v1941_v25  ;;  %v883_v20 = vadd.f32 %v882_v16, %v1943_v26 }
 0x180   : > { %1135 = vst [vmem:[%s1954_s25 + $0x40] sm:$0xff] %v1397_v17  ;;  %1136 = vst [vmem:[%s1954_s25 + $0x48] sm:$0xff] %v1398_v18  ;;  %v1399_v21 = vpack.c.bf16 %v770_v19, %v768_v13  ;;  %v1400_v22 = vpack.c.bf16 %v883_v20, %v881_v14 }
 0x182   : > { %1137 = vst [vmem:[%s1954_s25 + $0x50] sm:$0xff] %v1399_v21  ;;  %1138 = vst [vmem:[%s1954_s25 + $0x58] sm:$0xff] %v1400_v22  ;;  %v773_v27 = vpop.f32.mrb[12].mxu0  ;;  %v886_v28 = vpop.f32.mrb[12].mxu1 }
 0x183   : > { %v774_v29 = vadd.f32 %v773_v27, %v1937_v23  ;;  %v887_v30 = vadd.f32 %v886_v28, %v1939_v24  ;;  %v775_v31 = vpop.f32.mrb[13].mxu0  ;;  %v888_v32 = vpop.f32.mrb[13].mxu1 }
 0x184   : > { %v776_v33 = vadd.f32 %v775_v31, %v1941_v25  ;;  %v889_v34 = vadd.f32 %v888_v32, %v1943_v26  ;;  %v777_v35 = vpop.f32.mrb[14].mxu0  ;;  %v890_v36 = vpop.f32.mrb[14].mxu1 }
 0x185   : > { %v778_v37 = vadd.f32 %v777_v35, %v1937_v23  ;;  %v891_v38 = vadd.f32 %v890_v36, %v1939_v24  ;;  %v779_v39 = vpop.f32.mrb[15].mxu0  ;;  %v892_v40 = vpop.f32.mrb[15].mxu1 }
 0x186   : > { %v1401_v41 = vpack.c.bf16 %v776_v33, %v774_v29  ;;  %v1402_v42 = vpack.c.bf16 %v889_v34, %v887_v30  ;;  %v780_v43 = vadd.f32 %v779_v39, %v1941_v25  ;;  %v893_v44 = vadd.f32 %v892_v40, %v1943_v26 }
 0x188   : > { %1139 = vst [vmem:[%s1954_s25 + $0x60] sm:$0xff] %v1401_v41  ;;  %1140 = vst [vmem:[%s1954_s25 + $0x68] sm:$0xff] %v1402_v42  ;;  %v1403_v45 = vpack.c.bf16 %v780_v43, %v778_v37  ;;  %v1404_v46 = vpack.c.bf16 %v893_v44, %v891_v38 }
 0x18a   : > { %1141 = vst [vmem:[%s1954_s25 + $0x70] sm:$0xff] %v1403_v45  ;;  %1142 = vst [vmem:[%s1954_s25 + $0x78] sm:$0xff] %v1404_v46  ;;  %v783_v47 = vpop.f32.mrb[16].mxu0  ;;  %v896_v48 = vpop.f32.mrb[16].mxu1 }
 0x18b   : > { %v784_v49 = vadd.f32 %v783_v47, %v1937_v23  ;;  %v897_v50 = vadd.f32 %v896_v48, %v1939_v24  ;;  %v785_v51 = vpop.f32.mrb[17].mxu0  ;;  %v898_v52 = vpop.f32.mrb[17].mxu1 }
 0x18c   : > { %v786_v53 = vadd.f32 %v785_v51, %v1941_v25  ;;  %v899_v54 = vadd.f32 %v898_v52, %v1943_v26  ;;  %v787_v55 = vpop.f32.mrb[18].mxu0  ;;  %v900_v56 = vpop.f32.mrb[18].mxu1 }
 0x18d   : > { %v788_v57 = vadd.f32 %v787_v55, %v1937_v23  ;;  %v901_v58 = vadd.f32 %v900_v56, %v1939_v24  ;;  %v789_v59 = vpop.f32.mrb[19].mxu0  ;;  %v902_v60 = vpop.f32.mrb[19].mxu1 }
 0x18e   : > { %v1405_v61 = vpack.c.bf16 %v786_v53, %v784_v49  ;;  %v1406_v62 = vpack.c.bf16 %v899_v54, %v897_v50  ;;  %v790_v63 = vadd.f32 %v789_v59, %v1941_v25  ;;  %v903_v0 = vadd.f32 %v902_v60, %v1943_v26 }
 0x190   : > { %1143 = vst [vmem:[%s1954_s25 + $0x80] sm:$0xff] %v1405_v61  ;;  %1144 = vst [vmem:[%s1954_s25 + $0x88] sm:$0xff] %v1406_v62  ;;  %v1407_v1 = vpack.c.bf16 %v790_v63, %v788_v57  ;;  %v1408_v2 = vpack.c.bf16 %v903_v0, %v901_v58 }
 0x192   : > { %1145 = vst [vmem:[%s1954_s25 + $0x90] sm:$0xff] %v1407_v1  ;;  %1146 = vst [vmem:[%s1954_s25 + $0x98] sm:$0xff] %v1408_v2  ;;  %v793_v3 = vpop.f32.mrb[20].mxu0  ;;  %v906_v4 = vpop.f32.mrb[20].mxu1 }
 0x193   : > { %v794_v5 = vadd.f32 %v793_v3, %v1937_v23  ;;  %v907_v6 = vadd.f32 %v906_v4, %v1939_v24  ;;  %v795_v7 = vpop.f32.mrb[21].mxu0  ;;  %v908_v8 = vpop.f32.mrb[21].mxu1 }
 0x194   : > { %v796_v9 = vadd.f32 %v795_v7, %v1941_v25  ;;  %v909_v10 = vadd.f32 %v908_v8, %v1943_v26  ;;  %v797_v11 = vpop.f32.mrb[22].mxu0  ;;  %v910_v12 = vpop.f32.mrb[22].mxu1 }
 0x195   : > { %v798_v13 = vadd.f32 %v797_v11, %v1937_v23  ;;  %v911_v14 = vadd.f32 %v910_v12, %v1939_v24  ;;  %v799_v15 = vpop.f32.mrb[23].mxu0  ;;  %v912_v16 = vpop.f32.mrb[23].mxu1 }
 0x196   : > { %v1409_v17 = vpack.c.bf16 %v796_v9, %v794_v5  ;;  %v1410_v18 = vpack.c.bf16 %v909_v10, %v907_v6  ;;  %v800_v19 = vadd.f32 %v799_v15, %v1941_v25  ;;  %v913_v20 = vadd.f32 %v912_v16, %v1943_v26 }
 0x198   : > { %1147 = vst [vmem:[%s1954_s25 + $0xa0] sm:$0xff] %v1409_v17  ;;  %1148 = vst [vmem:[%s1954_s25 + $0xa8] sm:$0xff] %v1410_v18  ;;  %v1411_v21 = vpack.c.bf16 %v800_v19, %v798_v13  ;;  %v1412_v22 = vpack.c.bf16 %v913_v20, %v911_v14 }
 0x19a   : > { %1149 = vst [vmem:[%s1954_s25 + $0xb0] sm:$0xff] %v1411_v21  ;;  %1150 = vst [vmem:[%s1954_s25 + $0xb8] sm:$0xff] %v1412_v22  ;;  %v803_v27 = vpop.f32.mrb[24].mxu0  ;;  %v916_v28 = vpop.f32.mrb[24].mxu1 }
 0x19b   : > { %v804_v29 = vadd.f32 %v803_v27, %v1937_v23  ;;  %v917_v30 = vadd.f32 %v916_v28, %v1939_v24  ;;  %v805_v31 = vpop.f32.mrb[25].mxu0  ;;  %v918_v32 = vpop.f32.mrb[25].mxu1 }
 0x19c   : > { %v806_v33 = vadd.f32 %v805_v31, %v1941_v25  ;;  %v919_v34 = vadd.f32 %v918_v32, %v1943_v26  ;;  %v807_v35 = vpop.f32.mrb[26].mxu0  ;;  %v920_v36 = vpop.f32.mrb[26].mxu1 }
 0x19d   : > { %v808_v37 = vadd.f32 %v807_v35, %v1937_v23  ;;  %v921_v38 = vadd.f32 %v920_v36, %v1939_v24  ;;  %v809_v39 = vpop.f32.mrb[27].mxu0  ;;  %v922_v40 = vpop.f32.mrb[27].mxu1 }
 0x19e   : > { %v1413_v41 = vpack.c.bf16 %v806_v33, %v804_v29  ;;  %v1414_v42 = vpack.c.bf16 %v919_v34, %v917_v30  ;;  %v810_v43 = vadd.f32 %v809_v39, %v1941_v25  ;;  %v923_v44 = vadd.f32 %v922_v40, %v1943_v26 }
 0x1a0   : > { %1151 = vst [vmem:[%s1954_s25 + $0xc0] sm:$0xff] %v1413_v41  ;;  %1152 = vst [vmem:[%s1954_s25 + $0xc8] sm:$0xff] %v1414_v42  ;;  %v1415_v45 = vpack.c.bf16 %v810_v43, %v808_v37  ;;  %v1416_v46 = vpack.c.bf16 %v923_v44, %v921_v38 }
 0x1a2   : > { %1153 = vst [vmem:[%s1954_s25 + $0xd0] sm:$0xff] %v1415_v45  ;;  %1154 = vst [vmem:[%s1954_s25 + $0xd8] sm:$0xff] %v1416_v46  ;;  %v813_v47 = vpop.f32.mrb[28].mxu0  ;;  %v926_v48 = vpop.f32.mrb[28].mxu1 }
 0x1a3   : > { %v814_v49 = vadd.f32 %v813_v47, %v1937_v23  ;;  %v927_v50 = vadd.f32 %v926_v48, %v1939_v24  ;;  %v815_v51 = vpop.f32.mrb[29].mxu0  ;;  %v928_v52 = vpop.f32.mrb[29].mxu1 }
 0x1a4   : > { %v816_v53 = vadd.f32 %v815_v51, %v1941_v25  ;;  %v929_v54 = vadd.f32 %v928_v52, %v1943_v26  ;;  %v817_v55 = vpop.f32.mrb[30].mxu0  ;;  %v930_v56 = vpop.f32.mrb[30].mxu1 }
 0x1a5   : > { %v818_v57 = vadd.f32 %v817_v55, %v1937_v23  ;;  %v931_v58 = vadd.f32 %v930_v56, %v1939_v24  ;;  %v819_v59 = vpop.f32.mrb[31].mxu0  ;;  %v932_v60 = vpop.f32.mrb[31].mxu1 }
 0x1a6   : > { %v1417_v61 = vpack.c.bf16 %v816_v53, %v814_v49  ;;  %v1418_v62 = vpack.c.bf16 %v929_v54, %v927_v50  ;;  %v820_v63 = vadd.f32 %v819_v59, %v1941_v25  ;;  %v933_v0 = vadd.f32 %v932_v60, %v1943_v26 }
 0x1a8   : > { %1155 = vst [vmem:[%s1954_s25 + $0xe0] sm:$0xff] %v1417_v61  ;;  %1156 = vst [vmem:[%s1954_s25 + $0xe8] sm:$0xff] %v1418_v62  ;;  %v1419_v23 = vpack.c.bf16 %v820_v63, %v818_v57  ;;  %v1420_v24 = vpack.c.bf16 %v933_v0, %v931_v58 }
 0x1aa   : > { %1157 = vst [vmem:[%s1954_s25 + $0xf0] sm:$0xff] %v1419_v23  ;;  %1158 = vst [vmem:[%s1954_s25 + $0xf8] sm:$0xff] %v1420_v24 }
 0x1ab   : > { %1677 = shalt.err (!%p1674_p7)
}
 0x1ac   : > { %s1678_s22 = scalar_lea.hbm %s2045_s16, 4096  ;;  %s1682_s9 = scalar_lea.hbm %s2098_s3, 8192 }
 0x1ad   : > { %p1679_p9 = scmp.ne.s32.totalorder %s2045_s16, %s1678_s22  ;;  %p1683_p5 = scmp.lt.u32.totalorder %s2045_s16, %s2098_s3 }
 0x1ae   : > { %p1684_p11 = scmp.lt.u32.totalorder %s1682_s9, %s1678_s22  ;;  %p1686_p4 = scmp.lt.u32.totalorder %s1678_s22, %s2045_s16 }
 0x1af   : > { %p1680_p2 = pnand %p1679_p9, %p1856_p12 }
 0x1b0   : > { %p1685_p1 = por %p1684_p11, %p1683_p5 }
 0x1b1   : > { %p1681_p0 = pneg %p1680_p2 }
 0x1b2   : > { %p1687_p6 = por %p1686_p4, %p1685_p1 }
 0x1b4   : > { %p1688_p8 = pnand %p1687_p6, %p1681_p0 }
 0x1b6   : > { %1691 = shalt.err (!%p1688_p8)
}
 0x1b7   : > { %s1743_s4 = smov 256   ;;  %s1744_s25 = smov 16  }
 0x1b8   : > { %1429 = dma.vmem_to_hbm [thread:$0]  (%p1856_p12), %s2047_s5, 4096, %s2045_s16, %s1160_s27, %s1743_s4, %s1743_s4, %s1744_s25  }
 0x1b9 PF: > { %s1189_s26 = sand.u32 1, %s1722_s12   ;;  %p2113_p10 = scmp.ne.s32.totalorder %s2103_s19, 0 }
 0x1ba   : > { %p2114_p13 = scmp.ge.s32.totalorder %s1734_s15, 2  ;;  %s1190_s10 = scalar_lea.sflag [#allocation4], %s1189_s26 }
 0x1bc   : > { %p1440_p3 = pnand %p2114_p13, %p2113_p10 }
 0x1be   : > { %1717 = dma.done.wait (!%p1440_p3), %s1190_s10, 4096  }
 0x1bf   : > { %1719 = vsyncadd (!%p1440_p3), %s1190_s10, 4294963200  ;;  %p17_p7 = scmp.ge.s32.totalorder %s1821_s24, 4   ;;  %s2115_s12 = smov %s1726_s13 }
 0x1c0   : > { %s2116_s13 = smov %s1730_s14  ;;  %s2117_s14 = smov %s1852_s17 }
 0x1c1   : > { %s2118_s15 = smov %s1821_s24  ;;  %19 = sbr.rel (!%p17_p7) target bundleno = 6 (0x6), region = 81 }
 0x1c8   :  { %1195 = vsyncpa [#allocation3], 1 }
 0x1c9   :  { %1197 = vsyncpa [#allocation3 + $0x1], 1 }
 0x1ca   :  { %1198 = vsyncpa [#allocation6], 1 }
 0x1cb   :  { %1199 = vsyncpa [#allocation4], 1 }
 0x1cc   :  { %1201 = vsyncpa [#allocation4 + $0x1], 1 }

</bundles_post_ra>
